<compile_context>
chip_gen: v5e
topology: v5e:2x2
jax: 0.10.0
libtpu: 0.0.40
codegen_flags: <defaults>
</compile_context>

<pallas_src>
import functools

import jax
import jax.numpy as jnp
from jax.experimental import pallas as pl
from jax.experimental.pallas import tpu as pltpu


def _round_up(x, m):
    return (x + m - 1) // m * m


def _sigmoid(z):
    # tanh-based sigmoid: numerically stable, runs on the EUP slot.
    return 0.5 * (jnp.tanh(0.5 * z) + 1.0)


def _decoder_lstm_kernel(tok_ref,                    # SMEM (Bp,) int32 (prefetched)
                         emb_hbm,                    # HBM  (Vp, Hp) f32 (pl.ANY)
                         h_ref, c_ref,               # VMEM (BT, Hp) f32
                         wgx_ref, wgh_ref, bg_ref,   # VMEM gate weights / bias
                         wout_ref, bout_ref,         # VMEM out-proj weight / bias
                         out_ref, h_out_ref, c_out_ref,
                         x_ref, sem,                 # scratch: (BT, Hp) f32, DMA sems
                         *, bt, hp):
    i = pl.program_id(0)

    # ---- 1) kick off the BT-row embedding gather (table stays in HBM) -------
    copies = []
    for b in range(bt):                       # bt is static -> unrolled
        tok = tok_ref[i * bt + b]
        cp = pltpu.make_async_copy(emb_hbm.at[tok], x_ref.at[b], sem.at[b])
        cp.start()
        copies.append(cp)

    # ---- 2) h-side gate matmul overlaps the gather DMAs ---------------------
    gates = jnp.dot(h_ref[...].astype(wgh_ref.dtype), wgh_ref[...],
                    preferred_element_type=jnp.float32)

    # ---- 3) wait, ReLU the whole (BT, Hp) block, x-side gate matmul ---------
    for cp in copies:
        cp.wait()
    x = jnp.maximum(x_ref[...], 0.0).astype(wgx_ref.dtype)
    gates = gates + jnp.dot(x, wgx_ref[...], preferred_element_type=jnp.float32)
    gates = gates + bg_ref[...]

    # Gate order along 4*Hp: f, i, c~, o -- each gate owns full 128-lane groups.
    f = _sigmoid(gates[:, 0 * hp:1 * hp])
    ig = _sigmoid(gates[:, 1 * hp:2 * hp])
    ct = jnp.tanh(gates[:, 2 * hp:3 * hp])
    ot = _sigmoid(gates[:, 3 * hp:4 * hp])

    c_new = f * c_ref[...] + ig * ct
    h_new = ot * jnp.tanh(c_new)

    # ---- 4) output projection + log_softmax (padded cols carry -1e30 bias) --
    logits = (jnp.dot(h_new.astype(wout_ref.dtype), wout_ref[...],
                      preferred_element_type=jnp.float32) + bout_ref[...])
    m = jnp.max(logits, axis=1, keepdims=True)
    shifted = logits - m
    lse = jnp.log(jnp.sum(jnp.exp(shifted), axis=1, keepdims=True))

    out_ref[...] = shifted - lse
    h_out_ref[...] = h_new
    c_out_ref[...] = c_new


def _pad_params(params, H, V, Hp, Op, Vp, param_dtype):
    """Zero-pad logical params to lane/sublane-dense shapes for the kernel."""
    # Embedding stays f32 and HBM-resident: only BT rows are fetched per step,
    # so its dtype is irrelevant to the weight-streaming roofline.
    emb = jnp.zeros((Vp, Hp), jnp.float32).at[:V, :H].set(params["embedding"])

    # Split [x | h] gate weight into two (Hp, 4Hp) slabs so the kernel can do
    # gates = h @ Wh + relu(x) @ Wx without an xh concat scratch.  Each gate
    # owns a full 128-lane group along the 4*Hp axis.
    wgx = jnp.zeros((Hp, 4 * Hp), jnp.float32)
    wgh = jnp.zeros((Hp, 4 * Hp), jnp.float32)
    bg = jnp.zeros((1, 4 * Hp), jnp.float32)
    for g in range(4):
        wgate = params["w_gates"][:, g * H:(g + 1) * H]          # (2H, H)
        wgx = wgx.at[:H, g * Hp:g * Hp + H].set(wgate[:H])
        wgh = wgh.at[:H, g * Hp:g * Hp + H].set(wgate[H:])
        bg = bg.at[0, g * Hp:g * Hp + H].set(
            params["b_gates"][0, g * H:(g + 1) * H])

    w_out = jnp.zeros((Hp, Op), jnp.float32).at[:H, :V].set(params["w_out"])
    # -1e30 bias on padded vocab columns masks them out of the log_softmax.
    b_out = jnp.full((1, Op), -1e30, jnp.float32).at[0, :V].set(params["b_out"][0])

    return {"emb": emb,
            "wg_x": wgx.astype(param_dtype), "wg_h": wgh.astype(param_dtype),
            "b_gates": bg,
            "w_out": w_out.astype(param_dtype), "b_out": b_out}


def decoder_lstm_forward(token_ids, h, c, params, *, param_dtype=jnp.bfloat16):
    """token_ids: (B,) int; h, c: (B, H) f32. Returns (log_probs, (h', c'))."""
    B, H = h.shape
    V = params["w_out"].shape[1]                  # output_dim == vocab size

    BT = min(128, _round_up(B, 8))                # batch tile (feedback: 8 -> 128)
    Bp = _round_up(B, BT)
    Hp = _round_up(H, 128)
    Op = _round_up(V, 128)
    Vp = _round_up(V, 8)
    num_tiles = Bp // BT

    pp = _pad_params(params, H, V, Hp, Op, Vp, param_dtype)

    # Clamp token ids: the in-kernel HBM row DMA has no bounds check.
    tok_p = jnp.zeros((Bp,), jnp.int32).at[:B].set(
        jnp.clip(token_ids.astype(jnp.int32), 0, V - 1))
    h_p = jnp.zeros((Bp, Hp), jnp.float32).at[:B, :H].set(h)
    c_p = jnp.zeros((Bp, Hp), jnp.float32).at[:B, :H].set(c)

    kernel = functools.partial(_decoder_lstm_kernel, bt=BT, hp=Hp)

    const = lambda i, tok: (0, 0)                 # weights resident across tiles
    batch = lambda i, tok: (i, 0)                 # per-batch-tile blocks

    w_itemsize = pp["wg_x"].dtype.itemsize
    weight_bytes = ((pp["wg_x"].size + pp["wg_h"].size + pp["w_out"].size)
                    * w_itemsize
                    + (pp["b_gates"].size + pp["b_out"].size) * 4)
    cost = pl.CostEstimate(
        flops=2 * Bp * (2 * Hp) * (4 * Hp) + 2 * Bp * Hp * Op,
        transcendentals=Bp * (5 * Hp + Op),
        bytes_accessed=weight_bytes + Bp * Hp * 4 * 5 + Bp * Op * 4)

    out_p, h_new_p, c_new_p = pl.pallas_call(
        kernel,
        out_shape=(
            jax.ShapeDtypeStruct((Bp, Op), jnp.float32),
            jax.ShapeDtypeStruct((Bp, Hp), jnp.float32),
            jax.ShapeDtypeStruct((Bp, Hp), jnp.float32),
        ),
        grid_spec=pltpu.PrefetchScalarGridSpec(
            num_scalar_prefetch=1,                    # token ids -> SMEM
            grid=(num_tiles,),
            in_specs=[
                pl.BlockSpec(memory_space=pl.ANY),    # embedding table (HBM)
                pl.BlockSpec((BT, Hp), batch),        # h
                pl.BlockSpec((BT, Hp), batch),        # c
                pl.BlockSpec((Hp, 4 * Hp), const),    # W_x (gates)
                pl.BlockSpec((Hp, 4 * Hp), const),    # W_h (gates)
                pl.BlockSpec((1, 4 * Hp), const),     # gate bias
                pl.BlockSpec((Hp, Op), const),        # W_out
                pl.BlockSpec((1, Op), const),         # out bias (pad = -1e30)
            ],
            out_specs=(
                pl.BlockSpec((BT, Op), batch),
                pl.BlockSpec((BT, Hp), batch),
                pl.BlockSpec((BT, Hp), batch),
            ),
            scratch_shapes=[
                pltpu.VMEM((BT, Hp), jnp.float32),    # gathered embedding rows
                pltpu.SemaphoreType.DMA((BT,)),       # one sem per gathered row
            ],
        ),
        compiler_params=pltpu.CompilerParams(
            # Short grid: keep it "arbitrary" so both v7x TCs don't each
            # re-stream the whole weight set for 1-2 batch tiles; long grid:
            # shard batch tiles across cores.
            dimension_semantics=(("parallel",) if num_tiles > 2
                                 else ("arbitrary",)),
            vmem_limit_bytes=48 * 1024 * 1024,
        ),
        cost_estimate=cost,
    )(tok_p, pp["emb"], h_p, c_p,
      pp["wg_x"], pp["wg_h"], pp["b_gates"], pp["w_out"], pp["b_out"])

    return out_p[:B, :V], (h_new_p[:B, :H], c_new_p[:B, :H])


def make_params(key, hidden_dim, output_dim):
    """Deterministic synthetic parameters (shapes match the PyTorch module)."""
    ks = jax.random.split(key, 6)
    H, O = hidden_dim, output_dim
    s_lstm = 1.0 / jnp.sqrt(2.0 * H)
    s_out = 1.0 / jnp.sqrt(1.0 * H)
    # Gate order along the 4H axis: f, i, c~, o.  Weight layout: ([x|h], 4H).
    return {
        "embedding": jax.random.normal(ks[0], (O, H), jnp.float32),
        "w_gates": jax.random.uniform(ks[1], (2 * H, 4 * H), jnp.float32,
                                      -s_lstm, s_lstm),
        "b_gates": jax.random.uniform(ks[2], (1, 4 * H), jnp.float32,
                                      -s_lstm, s_lstm),
        "w_out": jax.random.uniform(ks[3], (H, O), jnp.float32, -s_out, s_out),
        "b_out": jax.random.uniform(ks[4], (1, O), jnp.float32, -s_out, s_out),
    }


def reference_forward(token_ids, h, c, params, param_dtype=jnp.float32):
    """Pure-JAX reference mirroring the PyTorch forward (is_dropout=False).

    With param_dtype=float32 this is the exact module semantics; with bfloat16
    it emulates the kernel's mixed-precision weight streaming (weights and
    matmul inputs rounded to bf16, all accumulation / softmax math in f32).
    """
    def rnd(a):
        return a.astype(param_dtype).astype(jnp.float32)

    H = h.shape[1]
    emb = params["embedding"][token_ids]
    x = jax.nn.relu(emb)
    xh = jnp.concatenate([rnd(x), rnd(h)], axis=1)
    gates = xh @ rnd(params["w_gates"]) + params["b_gates"]
    f = jax.nn.sigmoid(gates[:, 0 * H:1 * H])
    i = jax.nn.sigmoid(gates[:, 1 * H:2 * H])
    ct = jnp.tanh(gates[:, 2 * H:3 * H])
    ot = jax.nn.sigmoid(gates[:, 3 * H:4 * H])
    c_new = f * c + i * ct
    h_new = ot * jnp.tanh(c_new)
    logits = rnd(h_new) @ rnd(params["w_out"]) + params["b_out"]
    return jax.nn.log_softmax(logits, axis=1), (h_new, c_new)


if __name__ == "__main__":
    B, H, O = 2, 32, 16   # batch, hidden_dim, output_dim (max_length unused)
    key = jax.random.PRNGKey(0)
    k_tok, k_h, k_c, k_p = jax.random.split(key, 4)

    token_ids = jax.random.randint(k_tok, (B,), 0, O, dtype=jnp.int32)
    h0 = jax.random.normal(k_h, (B, H), jnp.float32)
    c0 = jax.random.normal(k_c, (B, H), jnp.float32)
    params = make_params(k_p, H, O)

    # --- f32 weights: tight check of the module's exact semantics ------------
    out32, (h32, c32) = decoder_lstm_forward(token_ids, h0, c0, params,
                                             param_dtype=jnp.float32)
    jax.block_until_ready((out32, h32, c32))
    r_out, (r_h, r_c) = reference_forward(token_ids, h0, c0, params)
    assert jnp.allclose(out32, r_out, atol=1e-4, rtol=1e-4)
    assert jnp.allclose(h32, r_h, atol=1e-4, rtol=1e-4)
    assert jnp.allclose(c32, r_c, atol=1e-4, rtol=1e-4)

    # --- bf16 weight streaming (perf config) vs. bf16-emulating reference ----
    out16, (h16, c16) = decoder_lstm_forward(token_ids, h0, c0, params,
                                             param_dtype=jnp.bfloat16)
    jax.block_until_ready((out16, h16, c16))
    e_out, (e_h, e_c) = reference_forward(token_ids, h0, c0, params,
                                          param_dtype=jnp.bfloat16)
    assert jnp.allclose(out16, e_out, atol=2e-2, rtol=2e-2)
    assert jnp.allclose(h16, e_h, atol=2e-2, rtol=2e-2)
    assert jnp.allclose(c16, e_c, atol=2e-2, rtol=2e-2)

    print("KERNEL_OK")
</pallas_src>

<mosaic_0001>
module attributes {stable_mosaic.version = 11 : i64} {
  func.func @_decoder_lstm_kernel(%arg0: i32, %arg1: memref<8xi32, #tpu.memory_space<smem>>, %arg2: memref<16x128xf32, #tpu.memory_space<any>>, %arg3: memref<8x128xf32, #tpu.memory_space<vmem>>, %arg4: memref<8x128xf32, #tpu.memory_space<vmem>>, %arg5: memref<128x512xf32, #tpu.memory_space<vmem>>, %arg6: memref<128x512xf32, #tpu.memory_space<vmem>>, %arg7: memref<1x512xf32, #tpu.memory_space<vmem>>, %arg8: memref<128x128xf32, #tpu.memory_space<vmem>>, %arg9: memref<1x128xf32, #tpu.memory_space<vmem>>, %arg10: memref<8x128xf32, #tpu.memory_space<vmem>>, %arg11: memref<8x128xf32, #tpu.memory_space<vmem>>, %arg12: memref<8x128xf32, #tpu.memory_space<vmem>>, %arg13: memref<8x128xf32, #tpu.memory_space<vmem>>, %arg14: memref<8x!tpu.dma_semaphore, #tpu.memory_space<semaphore_mem>>) attributes {dimension_semantics = [#tpu.dimension_semantics<arbitrary>], iteration_bounds = array<i64: 1>, scalar_prefetch = 1 : i64, scratch_operands = 2 : i64, tpu.core_type = #tpu.core_type<tc>, window_params = [{}, {transform_indices = @transform_1, window_bounds = array<i64: 8, 128>}, {transform_indices = @transform_2, window_bounds = array<i64: 8, 128>}, {pipeline_mode = #tpu.pipeline_mode<synchronous>, transform_indices = @transform_3, window_bounds = array<i64: 128, 512>}, {pipeline_mode = #tpu.pipeline_mode<synchronous>, transform_indices = @transform_4, window_bounds = array<i64: 128, 512>}, {pipeline_mode = #tpu.pipeline_mode<synchronous>, transform_indices = @transform_5, window_bounds = array<i64: 1, 512>}, {pipeline_mode = #tpu.pipeline_mode<synchronous>, transform_indices = @transform_6, window_bounds = array<i64: 128, 128>}, {pipeline_mode = #tpu.pipeline_mode<synchronous>, transform_indices = @transform_7, window_bounds = array<i64: 1, 128>}, {transform_indices = @transform_8, window_bounds = array<i64: 8, 128>}, {transform_indices = @transform_9, window_bounds = array<i64: 8, 128>}, {transform_indices = @transform_10, window_bounds = array<i64: 8, 128>}]} {
    %c8_i32 = arith.constant 8 : i32
    %0 = arith.muli %arg0, %c8_i32 : i32
    %c0_i32 = arith.constant 0 : i32
    %1 = arith.addi %0, %c0_i32 : i32
    %2 = arith.index_cast %1 : i32 to index
    %3 = memref.load %arg1[%2] : memref<8xi32, #tpu.memory_space<smem>>
    %c0_i32_0 = arith.constant 0 : i32
    %c0_i32_1 = arith.constant 0 : i32
    %c0_i32_2 = arith.constant 0 : i32
    %4 = tpu.memref_slice %arg2[%3, %c0_i32_2] : memref<16x128xf32, #tpu.memory_space<any>> -> memref<1x128xf32, #tpu.memory_space<any>>
    %5 = tpu.memref_squeeze %4 : memref<1x128xf32, #tpu.memory_space<any>> -> memref<128xf32, #tpu.memory_space<any>>
    %c0_i32_3 = arith.constant 0 : i32
    %6 = tpu.memref_slice %arg13[%c0_i32_0, %c0_i32_3] : memref<8x128xf32, #tpu.memory_space<vmem>> -> memref<1x128xf32, #tpu.memory_space<vmem>>
    %7 = tpu.memref_squeeze %6 : memref<1x128xf32, #tpu.memory_space<vmem>> -> memref<128xf32, #tpu.memory_space<vmem>>
    %8 = tpu.memref_slice %arg14[%c0_i32_1] : memref<8x!tpu.dma_semaphore, #tpu.memory_space<semaphore_mem>> -> memref<1x!tpu.dma_semaphore, #tpu.memory_space<semaphore_mem>>
    %9 = tpu.memref_squeeze %8 : memref<1x!tpu.dma_semaphore, #tpu.memory_space<semaphore_mem>> -> memref<!tpu.dma_semaphore, #tpu.memory_space<semaphore_mem>>
    tpu.enqueue_dma source(%5 : memref<128xf32, #tpu.memory_space<any>>) target(%7 : memref<128xf32, #tpu.memory_space<vmem>>) target_semaphore(%9 : memref<!tpu.dma_semaphore, #tpu.memory_space<semaphore_mem>>)
    %c8_i32_4 = arith.constant 8 : i32
    %10 = arith.muli %arg0, %c8_i32_4 : i32
    %c1_i32 = arith.constant 1 : i32
    %11 = arith.addi %10, %c1_i32 : i32
    %12 = arith.index_cast %11 : i32 to index
    %13 = memref.load %arg1[%12] : memref<8xi32, #tpu.memory_space<smem>>
    %c1_i32_5 = arith.constant 1 : i32
    %c1_i32_6 = arith.constant 1 : i32
    %c0_i32_7 = arith.constant 0 : i32
    %14 = tpu.memref_slice %arg2[%13, %c0_i32_7] : memref<16x128xf32, #tpu.memory_space<any>> -> memref<1x128xf32, #tpu.memory_space<any>>
    %15 = tpu.memref_squeeze %14 : memref<1x128xf32, #tpu.memory_space<any>> -> memref<128xf32, #tpu.memory_space<any>>
    %c0_i32_8 = arith.constant 0 : i32
    %16 = tpu.memref_slice %arg13[%c1_i32_5, %c0_i32_8] : memref<8x128xf32, #tpu.memory_space<vmem>> -> memref<1x128xf32, #tpu.memory_space<vmem>>
    %17 = tpu.memref_squeeze %16 : memref<1x128xf32, #tpu.memory_space<vmem>> -> memref<128xf32, #tpu.memory_space<vmem>>
    %18 = tpu.memref_slice %arg14[%c1_i32_6] : memref<8x!tpu.dma_semaphore, #tpu.memory_space<semaphore_mem>> -> memref<1x!tpu.dma_semaphore, #tpu.memory_space<semaphore_mem>>
    %19 = tpu.memref_squeeze %18 : memref<1x!tpu.dma_semaphore, #tpu.memory_space<semaphore_mem>> -> memref<!tpu.dma_semaphore, #tpu.memory_space<semaphore_mem>>
    tpu.enqueue_dma source(%15 : memref<128xf32, #tpu.memory_space<any>>) target(%17 : memref<128xf32, #tpu.memory_space<vmem>>) target_semaphore(%19 : memref<!tpu.dma_semaphore, #tpu.memory_space<semaphore_mem>>)
    %c8_i32_9 = arith.constant 8 : i32
    %20 = arith.muli %arg0, %c8_i32_9 : i32
    %c2_i32 = arith.constant 2 : i32
    %21 = arith.addi %20, %c2_i32 : i32
    %22 = arith.index_cast %21 : i32 to index
    %23 = memref.load %arg1[%22] : memref<8xi32, #tpu.memory_space<smem>>
    %c2_i32_10 = arith.constant 2 : i32
    %c2_i32_11 = arith.constant 2 : i32
    %c0_i32_12 = arith.constant 0 : i32
    %24 = tpu.memref_slice %arg2[%23, %c0_i32_12] : memref<16x128xf32, #tpu.memory_space<any>> -> memref<1x128xf32, #tpu.memory_space<any>>
    %25 = tpu.memref_squeeze %24 : memref<1x128xf32, #tpu.memory_space<any>> -> memref<128xf32, #tpu.memory_space<any>>
    %c0_i32_13 = arith.constant 0 : i32
    %26 = tpu.memref_slice %arg13[%c2_i32_10, %c0_i32_13] : memref<8x128xf32, #tpu.memory_space<vmem>> -> memref<1x128xf32, #tpu.memory_space<vmem>>
    %27 = tpu.memref_squeeze %26 : memref<1x128xf32, #tpu.memory_space<vmem>> -> memref<128xf32, #tpu.memory_space<vmem>>
    %28 = tpu.memref_slice %arg14[%c2_i32_11] : memref<8x!tpu.dma_semaphore, #tpu.memory_space<semaphore_mem>> -> memref<1x!tpu.dma_semaphore, #tpu.memory_space<semaphore_mem>>
    %29 = tpu.memref_squeeze %28 : memref<1x!tpu.dma_semaphore, #tpu.memory_space<semaphore_mem>> -> memref<!tpu.dma_semaphore, #tpu.memory_space<semaphore_mem>>
    tpu.enqueue_dma source(%25 : memref<128xf32, #tpu.memory_space<any>>) target(%27 : memref<128xf32, #tpu.memory_space<vmem>>) target_semaphore(%29 : memref<!tpu.dma_semaphore, #tpu.memory_space<semaphore_mem>>)
    %c8_i32_14 = arith.constant 8 : i32
    %30 = arith.muli %arg0, %c8_i32_14 : i32
    %c3_i32 = arith.constant 3 : i32
    %31 = arith.addi %30, %c3_i32 : i32
    %32 = arith.index_cast %31 : i32 to index
    %33 = memref.load %arg1[%32] : memref<8xi32, #tpu.memory_space<smem>>
    %c3_i32_15 = arith.constant 3 : i32
    %c3_i32_16 = arith.constant 3 : i32
    %c0_i32_17 = arith.constant 0 : i32
    %34 = tpu.memref_slice %arg2[%33, %c0_i32_17] : memref<16x128xf32, #tpu.memory_space<any>> -> memref<1x128xf32, #tpu.memory_space<any>>
    %35 = tpu.memref_squeeze %34 : memref<1x128xf32, #tpu.memory_space<any>> -> memref<128xf32, #tpu.memory_space<any>>
    %c0_i32_18 = arith.constant 0 : i32
    %36 = tpu.memref_slice %arg13[%c3_i32_15, %c0_i32_18] : memref<8x128xf32, #tpu.memory_space<vmem>> -> memref<1x128xf32, #tpu.memory_space<vmem>>
    %37 = tpu.memref_squeeze %36 : memref<1x128xf32, #tpu.memory_space<vmem>> -> memref<128xf32, #tpu.memory_space<vmem>>
    %38 = tpu.memref_slice %arg14[%c3_i32_16] : memref<8x!tpu.dma_semaphore, #tpu.memory_space<semaphore_mem>> -> memref<1x!tpu.dma_semaphore, #tpu.memory_space<semaphore_mem>>
    %39 = tpu.memref_squeeze %38 : memref<1x!tpu.dma_semaphore, #tpu.memory_space<semaphore_mem>> -> memref<!tpu.dma_semaphore, #tpu.memory_space<semaphore_mem>>
    tpu.enqueue_dma source(%35 : memref<128xf32, #tpu.memory_space<any>>) target(%37 : memref<128xf32, #tpu.memory_space<vmem>>) target_semaphore(%39 : memref<!tpu.dma_semaphore, #tpu.memory_space<semaphore_mem>>)
    %c8_i32_19 = arith.constant 8 : i32
    %40 = arith.muli %arg0, %c8_i32_19 : i32
    %c4_i32 = arith.constant 4 : i32
    %41 = arith.addi %40, %c4_i32 : i32
    %42 = arith.index_cast %41 : i32 to index
    %43 = memref.load %arg1[%42] : memref<8xi32, #tpu.memory_space<smem>>
    %c4_i32_20 = arith.constant 4 : i32
    %c4_i32_21 = arith.constant 4 : i32
    %c0_i32_22 = arith.constant 0 : i32
    %44 = tpu.memref_slice %arg2[%43, %c0_i32_22] : memref<16x128xf32, #tpu.memory_space<any>> -> memref<1x128xf32, #tpu.memory_space<any>>
    %45 = tpu.memref_squeeze %44 : memref<1x128xf32, #tpu.memory_space<any>> -> memref<128xf32, #tpu.memory_space<any>>
    %c0_i32_23 = arith.constant 0 : i32
    %46 = tpu.memref_slice %arg13[%c4_i32_20, %c0_i32_23] : memref<8x128xf32, #tpu.memory_space<vmem>> -> memref<1x128xf32, #tpu.memory_space<vmem>>
    %47 = tpu.memref_squeeze %46 : memref<1x128xf32, #tpu.memory_space<vmem>> -> memref<128xf32, #tpu.memory_space<vmem>>
    %48 = tpu.memref_slice %arg14[%c4_i32_21] : memref<8x!tpu.dma_semaphore, #tpu.memory_space<semaphore_mem>> -> memref<1x!tpu.dma_semaphore, #tpu.memory_space<semaphore_mem>>
    %49 = tpu.memref_squeeze %48 : memref<1x!tpu.dma_semaphore, #tpu.memory_space<semaphore_mem>> -> memref<!tpu.dma_semaphore, #tpu.memory_space<semaphore_mem>>
    tpu.enqueue_dma source(%45 : memref<128xf32, #tpu.memory_space<any>>) target(%47 : memref<128xf32, #tpu.memory_space<vmem>>) target_semaphore(%49 : memref<!tpu.dma_semaphore, #tpu.memory_space<semaphore_mem>>)
    %c8_i32_24 = arith.constant 8 : i32
    %50 = arith.muli %arg0, %c8_i32_24 : i32
    %c5_i32 = arith.constant 5 : i32
    %51 = arith.addi %50, %c5_i32 : i32
    %52 = arith.index_cast %51 : i32 to index
    %53 = memref.load %arg1[%52] : memref<8xi32, #tpu.memory_space<smem>>
    %c5_i32_25 = arith.constant 5 : i32
    %c5_i32_26 = arith.constant 5 : i32
    %c0_i32_27 = arith.constant 0 : i32
    %54 = tpu.memref_slice %arg2[%53, %c0_i32_27] : memref<16x128xf32, #tpu.memory_space<any>> -> memref<1x128xf32, #tpu.memory_space<any>>
    %55 = tpu.memref_squeeze %54 : memref<1x128xf32, #tpu.memory_space<any>> -> memref<128xf32, #tpu.memory_space<any>>
    %c0_i32_28 = arith.constant 0 : i32
    %56 = tpu.memref_slice %arg13[%c5_i32_25, %c0_i32_28] : memref<8x128xf32, #tpu.memory_space<vmem>> -> memref<1x128xf32, #tpu.memory_space<vmem>>
    %57 = tpu.memref_squeeze %56 : memref<1x128xf32, #tpu.memory_space<vmem>> -> memref<128xf32, #tpu.memory_space<vmem>>
    %58 = tpu.memref_slice %arg14[%c5_i32_26] : memref<8x!tpu.dma_semaphore, #tpu.memory_space<semaphore_mem>> -> memref<1x!tpu.dma_semaphore, #tpu.memory_space<semaphore_mem>>
    %59 = tpu.memref_squeeze %58 : memref<1x!tpu.dma_semaphore, #tpu.memory_space<semaphore_mem>> -> memref<!tpu.dma_semaphore, #tpu.memory_space<semaphore_mem>>
    tpu.enqueue_dma source(%55 : memref<128xf32, #tpu.memory_space<any>>) target(%57 : memref<128xf32, #tpu.memory_space<vmem>>) target_semaphore(%59 : memref<!tpu.dma_semaphore, #tpu.memory_space<semaphore_mem>>)
    %c8_i32_29 = arith.constant 8 : i32
    %60 = arith.muli %arg0, %c8_i32_29 : i32
    %c6_i32 = arith.constant 6 : i32
    %61 = arith.addi %60, %c6_i32 : i32
    %62 = arith.index_cast %61 : i32 to index
    %63 = memref.load %arg1[%62] : memref<8xi32, #tpu.memory_space<smem>>
    %c6_i32_30 = arith.constant 6 : i32
    %c6_i32_31 = arith.constant 6 : i32
    %c0_i32_32 = arith.constant 0 : i32
    %64 = tpu.memref_slice %arg2[%63, %c0_i32_32] : memref<16x128xf32, #tpu.memory_space<any>> -> memref<1x128xf32, #tpu.memory_space<any>>
    %65 = tpu.memref_squeeze %64 : memref<1x128xf32, #tpu.memory_space<any>> -> memref<128xf32, #tpu.memory_space<any>>
    %c0_i32_33 = arith.constant 0 : i32
    %66 = tpu.memref_slice %arg13[%c6_i32_30, %c0_i32_33] : memref<8x128xf32, #tpu.memory_space<vmem>> -> memref<1x128xf32, #tpu.memory_space<vmem>>
    %67 = tpu.memref_squeeze %66 : memref<1x128xf32, #tpu.memory_space<vmem>> -> memref<128xf32, #tpu.memory_space<vmem>>
    %68 = tpu.memref_slice %arg14[%c6_i32_31] : memref<8x!tpu.dma_semaphore, #tpu.memory_space<semaphore_mem>> -> memref<1x!tpu.dma_semaphore, #tpu.memory_space<semaphore_mem>>
    %69 = tpu.memref_squeeze %68 : memref<1x!tpu.dma_semaphore, #tpu.memory_space<semaphore_mem>> -> memref<!tpu.dma_semaphore, #tpu.memory_space<semaphore_mem>>
    tpu.enqueue_dma source(%65 : memref<128xf32, #tpu.memory_space<any>>) target(%67 : memref<128xf32, #tpu.memory_space<vmem>>) target_semaphore(%69 : memref<!tpu.dma_semaphore, #tpu.memory_space<semaphore_mem>>)
    %c8_i32_34 = arith.constant 8 : i32
    %70 = arith.muli %arg0, %c8_i32_34 : i32
    %c7_i32 = arith.constant 7 : i32
    %71 = arith.addi %70, %c7_i32 : i32
    %72 = arith.index_cast %71 : i32 to index
    %73 = memref.load %arg1[%72] : memref<8xi32, #tpu.memory_space<smem>>
    %c7_i32_35 = arith.constant 7 : i32
    %c7_i32_36 = arith.constant 7 : i32
    %c0_i32_37 = arith.constant 0 : i32
    %74 = tpu.memref_slice %arg2[%73, %c0_i32_37] : memref<16x128xf32, #tpu.memory_space<any>> -> memref<1x128xf32, #tpu.memory_space<any>>
    %75 = tpu.memref_squeeze %74 : memref<1x128xf32, #tpu.memory_space<any>> -> memref<128xf32, #tpu.memory_space<any>>
    %c0_i32_38 = arith.constant 0 : i32
    %76 = tpu.memref_slice %arg13[%c7_i32_35, %c0_i32_38] : memref<8x128xf32, #tpu.memory_space<vmem>> -> memref<1x128xf32, #tpu.memory_space<vmem>>
    %77 = tpu.memref_squeeze %76 : memref<1x128xf32, #tpu.memory_space<vmem>> -> memref<128xf32, #tpu.memory_space<vmem>>
    %78 = tpu.memref_slice %arg14[%c7_i32_36] : memref<8x!tpu.dma_semaphore, #tpu.memory_space<semaphore_mem>> -> memref<1x!tpu.dma_semaphore, #tpu.memory_space<semaphore_mem>>
    %79 = tpu.memref_squeeze %78 : memref<1x!tpu.dma_semaphore, #tpu.memory_space<semaphore_mem>> -> memref<!tpu.dma_semaphore, #tpu.memory_space<semaphore_mem>>
    tpu.enqueue_dma source(%75 : memref<128xf32, #tpu.memory_space<any>>) target(%77 : memref<128xf32, #tpu.memory_space<vmem>>) target_semaphore(%79 : memref<!tpu.dma_semaphore, #tpu.memory_space<semaphore_mem>>)
    %c0 = arith.constant 0 : index
    %c0_39 = arith.constant 0 : index
    %80 = vector.load %arg3[%c0, %c0_39] : memref<8x128xf32, #tpu.memory_space<vmem>>, vector<8x128xf32>
    %c0_40 = arith.constant 0 : index
    %c0_41 = arith.constant 0 : index
    %81 = vector.load %arg6[%c0_40, %c0_41] : memref<128x512xf32, #tpu.memory_space<vmem>>, vector<128x512xf32>
    %cst = arith.constant dense<0.000000e+00> : vector<8x512xf32>
    %82 = tpu.matmul %80, %81, %cst {dimension_numbers = #tpu.dot_dimension_numbers<[1], [0], [0], [1], [0, 0, 1, 1], [], []>} : vector<8x128xf32>, vector<128x512xf32>, vector<8x512xf32> -> vector<8x512xf32>
    %c0_i32_42 = arith.constant 0 : i32
    %c0_i32_43 = arith.constant 0 : i32
    %c0_i32_44 = arith.constant 0 : i32
    %83 = tpu.memref_slice %arg2[%3, %c0_i32_44] : memref<16x128xf32, #tpu.memory_space<any>> -> memref<1x128xf32, #tpu.memory_space<any>>
    %84 = tpu.memref_squeeze %83 : memref<1x128xf32, #tpu.memory_space<any>> -> memref<128xf32, #tpu.memory_space<any>>
    %c0_i32_45 = arith.constant 0 : i32
    %85 = tpu.memref_slice %arg13[%c0_i32_42, %c0_i32_45] : memref<8x128xf32, #tpu.memory_space<vmem>> -> memref<1x128xf32, #tpu.memory_space<vmem>>
    %86 = tpu.memref_squeeze %85 : memref<1x128xf32, #tpu.memory_space<vmem>> -> memref<128xf32, #tpu.memory_space<vmem>>
    %87 = tpu.memref_slice %arg14[%c0_i32_43] : memref<8x!tpu.dma_semaphore, #tpu.memory_space<semaphore_mem>> -> memref<1x!tpu.dma_semaphore, #tpu.memory_space<semaphore_mem>>
    %88 = tpu.memref_squeeze %87 : memref<1x!tpu.dma_semaphore, #tpu.memory_space<semaphore_mem>> -> memref<!tpu.dma_semaphore, #tpu.memory_space<semaphore_mem>>
    tpu.wait_dma2 semaphore(%88 : memref<!tpu.dma_semaphore, #tpu.memory_space<semaphore_mem>>) src(%84 : memref<128xf32, #tpu.memory_space<any>>) dst(%86 : memref<128xf32, #tpu.memory_space<vmem>>)
    %c1_i32_46 = arith.constant 1 : i32
    %c1_i32_47 = arith.constant 1 : i32
    %c0_i32_48 = arith.constant 0 : i32
    %89 = tpu.memref_slice %arg2[%13, %c0_i32_48] : memref<16x128xf32, #tpu.memory_space<any>> -> memref<1x128xf32, #tpu.memory_space<any>>
    %90 = tpu.memref_squeeze %89 : memref<1x128xf32, #tpu.memory_space<any>> -> memref<128xf32, #tpu.memory_space<any>>
    %c0_i32_49 = arith.constant 0 : i32
    %91 = tpu.memref_slice %arg13[%c1_i32_46, %c0_i32_49] : memref<8x128xf32, #tpu.memory_space<vmem>> -> memref<1x128xf32, #tpu.memory_space<vmem>>
    %92 = tpu.memref_squeeze %91 : memref<1x128xf32, #tpu.memory_space<vmem>> -> memref<128xf32, #tpu.memory_space<vmem>>
    %93 = tpu.memref_slice %arg14[%c1_i32_47] : memref<8x!tpu.dma_semaphore, #tpu.memory_space<semaphore_mem>> -> memref<1x!tpu.dma_semaphore, #tpu.memory_space<semaphore_mem>>
    %94 = tpu.memref_squeeze %93 : memref<1x!tpu.dma_semaphore, #tpu.memory_space<semaphore_mem>> -> memref<!tpu.dma_semaphore, #tpu.memory_space<semaphore_mem>>
    tpu.wait_dma2 semaphore(%94 : memref<!tpu.dma_semaphore, #tpu.memory_space<semaphore_mem>>) src(%90 : memref<128xf32, #tpu.memory_space<any>>) dst(%92 : memref<128xf32, #tpu.memory_space<vmem>>)
    %c2_i32_50 = arith.constant 2 : i32
    %c2_i32_51 = arith.constant 2 : i32
    %c0_i32_52 = arith.constant 0 : i32
    %95 = tpu.memref_slice %arg2[%23, %c0_i32_52] : memref<16x128xf32, #tpu.memory_space<any>> -> memref<1x128xf32, #tpu.memory_space<any>>
    %96 = tpu.memref_squeeze %95 : memref<1x128xf32, #tpu.memory_space<any>> -> memref<128xf32, #tpu.memory_space<any>>
    %c0_i32_53 = arith.constant 0 : i32
    %97 = tpu.memref_slice %arg13[%c2_i32_50, %c0_i32_53] : memref<8x128xf32, #tpu.memory_space<vmem>> -> memref<1x128xf32, #tpu.memory_space<vmem>>
    %98 = tpu.memref_squeeze %97 : memref<1x128xf32, #tpu.memory_space<vmem>> -> memref<128xf32, #tpu.memory_space<vmem>>
    %99 = tpu.memref_slice %arg14[%c2_i32_51] : memref<8x!tpu.dma_semaphore, #tpu.memory_space<semaphore_mem>> -> memref<1x!tpu.dma_semaphore, #tpu.memory_space<semaphore_mem>>
    %100 = tpu.memref_squeeze %99 : memref<1x!tpu.dma_semaphore, #tpu.memory_space<semaphore_mem>> -> memref<!tpu.dma_semaphore, #tpu.memory_space<semaphore_mem>>
    tpu.wait_dma2 semaphore(%100 : memref<!tpu.dma_semaphore, #tpu.memory_space<semaphore_mem>>) src(%96 : memref<128xf32, #tpu.memory_space<any>>) dst(%98 : memref<128xf32, #tpu.memory_space<vmem>>)
    %c3_i32_54 = arith.constant 3 : i32
    %c3_i32_55 = arith.constant 3 : i32
    %c0_i32_56 = arith.constant 0 : i32
    %101 = tpu.memref_slice %arg2[%33, %c0_i32_56] : memref<16x128xf32, #tpu.memory_space<any>> -> memref<1x128xf32, #tpu.memory_space<any>>
    %102 = tpu.memref_squeeze %101 : memref<1x128xf32, #tpu.memory_space<any>> -> memref<128xf32, #tpu.memory_space<any>>
    %c0_i32_57 = arith.constant 0 : i32
    %103 = tpu.memref_slice %arg13[%c3_i32_54, %c0_i32_57] : memref<8x128xf32, #tpu.memory_space<vmem>> -> memref<1x128xf32, #tpu.memory_space<vmem>>
    %104 = tpu.memref_squeeze %103 : memref<1x128xf32, #tpu.memory_space<vmem>> -> memref<128xf32, #tpu.memory_space<vmem>>
    %105 = tpu.memref_slice %arg14[%c3_i32_55] : memref<8x!tpu.dma_semaphore, #tpu.memory_space<semaphore_mem>> -> memref<1x!tpu.dma_semaphore, #tpu.memory_space<semaphore_mem>>
    %106 = tpu.memref_squeeze %105 : memref<1x!tpu.dma_semaphore, #tpu.memory_space<semaphore_mem>> -> memref<!tpu.dma_semaphore, #tpu.memory_space<semaphore_mem>>
    tpu.wait_dma2 semaphore(%106 : memref<!tpu.dma_semaphore, #tpu.memory_space<semaphore_mem>>) src(%102 : memref<128xf32, #tpu.memory_space<any>>) dst(%104 : memref<128xf32, #tpu.memory_space<vmem>>)
    %c4_i32_58 = arith.constant 4 : i32
    %c4_i32_59 = arith.constant 4 : i32
    %c0_i32_60 = arith.constant 0 : i32
    %107 = tpu.memref_slice %arg2[%43, %c0_i32_60] : memref<16x128xf32, #tpu.memory_space<any>> -> memref<1x128xf32, #tpu.memory_space<any>>
    %108 = tpu.memref_squeeze %107 : memref<1x128xf32, #tpu.memory_space<any>> -> memref<128xf32, #tpu.memory_space<any>>
    %c0_i32_61 = arith.constant 0 : i32
    %109 = tpu.memref_slice %arg13[%c4_i32_58, %c0_i32_61] : memref<8x128xf32, #tpu.memory_space<vmem>> -> memref<1x128xf32, #tpu.memory_space<vmem>>
    %110 = tpu.memref_squeeze %109 : memref<1x128xf32, #tpu.memory_space<vmem>> -> memref<128xf32, #tpu.memory_space<vmem>>
    %111 = tpu.memref_slice %arg14[%c4_i32_59] : memref<8x!tpu.dma_semaphore, #tpu.memory_space<semaphore_mem>> -> memref<1x!tpu.dma_semaphore, #tpu.memory_space<semaphore_mem>>
    %112 = tpu.memref_squeeze %111 : memref<1x!tpu.dma_semaphore, #tpu.memory_space<semaphore_mem>> -> memref<!tpu.dma_semaphore, #tpu.memory_space<semaphore_mem>>
    tpu.wait_dma2 semaphore(%112 : memref<!tpu.dma_semaphore, #tpu.memory_space<semaphore_mem>>) src(%108 : memref<128xf32, #tpu.memory_space<any>>) dst(%110 : memref<128xf32, #tpu.memory_space<vmem>>)
    %c5_i32_62 = arith.constant 5 : i32
    %c5_i32_63 = arith.constant 5 : i32
    %c0_i32_64 = arith.constant 0 : i32
    %113 = tpu.memref_slice %arg2[%53, %c0_i32_64] : memref<16x128xf32, #tpu.memory_space<any>> -> memref<1x128xf32, #tpu.memory_space<any>>
    %114 = tpu.memref_squeeze %113 : memref<1x128xf32, #tpu.memory_space<any>> -> memref<128xf32, #tpu.memory_space<any>>
    %c0_i32_65 = arith.constant 0 : i32
    %115 = tpu.memref_slice %arg13[%c5_i32_62, %c0_i32_65] : memref<8x128xf32, #tpu.memory_space<vmem>> -> memref<1x128xf32, #tpu.memory_space<vmem>>
    %116 = tpu.memref_squeeze %115 : memref<1x128xf32, #tpu.memory_space<vmem>> -> memref<128xf32, #tpu.memory_space<vmem>>
    %117 = tpu.memref_slice %arg14[%c5_i32_63] : memref<8x!tpu.dma_semaphore, #tpu.memory_space<semaphore_mem>> -> memref<1x!tpu.dma_semaphore, #tpu.memory_space<semaphore_mem>>
    %118 = tpu.memref_squeeze %117 : memref<1x!tpu.dma_semaphore, #tpu.memory_space<semaphore_mem>> -> memref<!tpu.dma_semaphore, #tpu.memory_space<semaphore_mem>>
    tpu.wait_dma2 semaphore(%118 : memref<!tpu.dma_semaphore, #tpu.memory_space<semaphore_mem>>) src(%114 : memref<128xf32, #tpu.memory_space<any>>) dst(%116 : memref<128xf32, #tpu.memory_space<vmem>>)
    %c6_i32_66 = arith.constant 6 : i32
    %c6_i32_67 = arith.constant 6 : i32
    %c0_i32_68 = arith.constant 0 : i32
    %119 = tpu.memref_slice %arg2[%63, %c0_i32_68] : memref<16x128xf32, #tpu.memory_space<any>> -> memref<1x128xf32, #tpu.memory_space<any>>
    %120 = tpu.memref_squeeze %119 : memref<1x128xf32, #tpu.memory_space<any>> -> memref<128xf32, #tpu.memory_space<any>>
    %c0_i32_69 = arith.constant 0 : i32
    %121 = tpu.memref_slice %arg13[%c6_i32_66, %c0_i32_69] : memref<8x128xf32, #tpu.memory_space<vmem>> -> memref<1x128xf32, #tpu.memory_space<vmem>>
    %122 = tpu.memref_squeeze %121 : memref<1x128xf32, #tpu.memory_space<vmem>> -> memref<128xf32, #tpu.memory_space<vmem>>
    %123 = tpu.memref_slice %arg14[%c6_i32_67] : memref<8x!tpu.dma_semaphore, #tpu.memory_space<semaphore_mem>> -> memref<1x!tpu.dma_semaphore, #tpu.memory_space<semaphore_mem>>
    %124 = tpu.memref_squeeze %123 : memref<1x!tpu.dma_semaphore, #tpu.memory_space<semaphore_mem>> -> memref<!tpu.dma_semaphore, #tpu.memory_space<semaphore_mem>>
    tpu.wait_dma2 semaphore(%124 : memref<!tpu.dma_semaphore, #tpu.memory_space<semaphore_mem>>) src(%120 : memref<128xf32, #tpu.memory_space<any>>) dst(%122 : memref<128xf32, #tpu.memory_space<vmem>>)
    %c7_i32_70 = arith.constant 7 : i32
    %c7_i32_71 = arith.constant 7 : i32
    %c0_i32_72 = arith.constant 0 : i32
    %125 = tpu.memref_slice %arg2[%73, %c0_i32_72] : memref<16x128xf32, #tpu.memory_space<any>> -> memref<1x128xf32, #tpu.memory_space<any>>
    %126 = tpu.memref_squeeze %125 : memref<1x128xf32, #tpu.memory_space<any>> -> memref<128xf32, #tpu.memory_space<any>>
    %c0_i32_73 = arith.constant 0 : i32
    %127 = tpu.memref_slice %arg13[%c7_i32_70, %c0_i32_73] : memref<8x128xf32, #tpu.memory_space<vmem>> -> memref<1x128xf32, #tpu.memory_space<vmem>>
    %128 = tpu.memref_squeeze %127 : memref<1x128xf32, #tpu.memory_space<vmem>> -> memref<128xf32, #tpu.memory_space<vmem>>
    %129 = tpu.memref_slice %arg14[%c7_i32_71] : memref<8x!tpu.dma_semaphore, #tpu.memory_space<semaphore_mem>> -> memref<1x!tpu.dma_semaphore, #tpu.memory_space<semaphore_mem>>
    %130 = tpu.memref_squeeze %129 : memref<1x!tpu.dma_semaphore, #tpu.memory_space<semaphore_mem>> -> memref<!tpu.dma_semaphore, #tpu.memory_space<semaphore_mem>>
    tpu.wait_dma2 semaphore(%130 : memref<!tpu.dma_semaphore, #tpu.memory_space<semaphore_mem>>) src(%126 : memref<128xf32, #tpu.memory_space<any>>) dst(%128 : memref<128xf32, #tpu.memory_space<vmem>>)
    %c0_74 = arith.constant 0 : index
    %c0_75 = arith.constant 0 : index
    %131 = vector.load %arg13[%c0_74, %c0_75] : memref<8x128xf32, #tpu.memory_space<vmem>>, vector<8x128xf32>
    %cst_76 = arith.constant 0.000000e+00 : f32
    %132 = vector.broadcast %cst_76 : f32 to vector<8x128xf32>
    %133 = arith.maximumf %131, %132 : vector<8x128xf32>
    %c0_77 = arith.constant 0 : index
    %c0_78 = arith.constant 0 : index
    %134 = vector.load %arg5[%c0_77, %c0_78] : memref<128x512xf32, #tpu.memory_space<vmem>>, vector<128x512xf32>
    %cst_79 = arith.constant dense<0.000000e+00> : vector<8x512xf32>
    %135 = tpu.matmul %133, %134, %cst_79 {dimension_numbers = #tpu.dot_dimension_numbers<[1], [0], [0], [1], [0, 0, 1, 1], [], []>} : vector<8x128xf32>, vector<128x512xf32>, vector<8x512xf32> -> vector<8x512xf32>
    %136 = arith.addf %82, %135 : vector<8x512xf32>
    %c0_80 = arith.constant 0 : index
    %c0_81 = arith.constant 0 : index
    %137 = vector.load %arg7[%c0_80, %c0_81] : memref<1x512xf32, #tpu.memory_space<vmem>>, vector<1x512xf32>
    %138 = vector.broadcast %137 : vector<1x512xf32> to vector<8x512xf32>
    %139 = arith.addf %136, %138 : vector<8x512xf32>
    %140 = vector.extract_strided_slice %139 {offsets = [0, 0], sizes = [8, 128], strides = [1, 1]} : vector<8x512xf32> to vector<8x128xf32>
    %cst_82 = arith.constant 5.000000e-01 : f32
    %141 = vector.broadcast %cst_82 : f32 to vector<8x128xf32>
    %142 = arith.mulf %141, %140 : vector<8x128xf32>
    %143 = math.tanh %142 : vector<8x128xf32>
    %cst_83 = arith.constant 1.000000e+00 : f32
    %144 = vector.broadcast %cst_83 : f32 to vector<8x128xf32>
    %145 = arith.addf %143, %144 : vector<8x128xf32>
    %cst_84 = arith.constant 5.000000e-01 : f32
    %146 = vector.broadcast %cst_84 : f32 to vector<8x128xf32>
    %147 = arith.mulf %146, %145 : vector<8x128xf32>
    %148 = vector.extract_strided_slice %139 {offsets = [0, 128], sizes = [8, 128], strides = [1, 1]} : vector<8x512xf32> to vector<8x128xf32>
    %cst_85 = arith.constant 5.000000e-01 : f32
    %149 = vector.broadcast %cst_85 : f32 to vector<8x128xf32>
    %150 = arith.mulf %149, %148 : vector<8x128xf32>
    %151 = math.tanh %150 : vector<8x128xf32>
    %cst_86 = arith.constant 1.000000e+00 : f32
    %152 = vector.broadcast %cst_86 : f32 to vector<8x128xf32>
    %153 = arith.addf %151, %152 : vector<8x128xf32>
    %cst_87 = arith.constant 5.000000e-01 : f32
    %154 = vector.broadcast %cst_87 : f32 to vector<8x128xf32>
    %155 = arith.mulf %154, %153 : vector<8x128xf32>
    %156 = vector.extract_strided_slice %139 {offsets = [0, 256], sizes = [8, 128], strides = [1, 1]} : vector<8x512xf32> to vector<8x128xf32>
    %157 = math.tanh %156 : vector<8x128xf32>
    %158 = vector.extract_strided_slice %139 {offsets = [0, 384], sizes = [8, 128], strides = [1, 1]} : vector<8x512xf32> to vector<8x128xf32>
    %cst_88 = arith.constant 5.000000e-01 : f32
    %159 = vector.broadcast %cst_88 : f32 to vector<8x128xf32>
    %160 = arith.mulf %159, %158 : vector<8x128xf32>
    %161 = math.tanh %160 : vector<8x128xf32>
    %cst_89 = arith.constant 1.000000e+00 : f32
    %162 = vector.broadcast %cst_89 : f32 to vector<8x128xf32>
    %163 = arith.addf %161, %162 : vector<8x128xf32>
    %cst_90 = arith.constant 5.000000e-01 : f32
    %164 = vector.broadcast %cst_90 : f32 to vector<8x128xf32>
    %165 = arith.mulf %164, %163 : vector<8x128xf32>
    %c0_91 = arith.constant 0 : index
    %c0_92 = arith.constant 0 : index
    %166 = vector.load %arg4[%c0_91, %c0_92] : memref<8x128xf32, #tpu.memory_space<vmem>>, vector<8x128xf32>
    %167 = arith.mulf %147, %166 : vector<8x128xf32>
    %168 = arith.mulf %155, %157 : vector<8x128xf32>
    %169 = arith.addf %167, %168 : vector<8x128xf32>
    %170 = math.tanh %169 : vector<8x128xf32>
    %171 = arith.mulf %165, %170 : vector<8x128xf32>
    %c0_93 = arith.constant 0 : index
    %c0_94 = arith.constant 0 : index
    %172 = vector.load %arg8[%c0_93, %c0_94] : memref<128x128xf32, #tpu.memory_space<vmem>>, vector<128x128xf32>
    %cst_95 = arith.constant dense<0.000000e+00> : vector<8x128xf32>
    %173 = tpu.matmul %171, %172, %cst_95 {dimension_numbers = #tpu.dot_dimension_numbers<[1], [0], [0], [1], [0, 0, 1, 1], [], []>} : vector<8x128xf32>, vector<128x128xf32>, vector<8x128xf32> -> vector<8x128xf32>
    %c0_96 = arith.constant 0 : index
    %c0_97 = arith.constant 0 : index
    %174 = vector.load %arg9[%c0_96, %c0_97] : memref<1x128xf32, #tpu.memory_space<vmem>>, vector<1x128xf32>
    %175 = vector.broadcast %174 : vector<1x128xf32> to vector<8x128xf32>
    %176 = arith.addf %173, %175 : vector<8x128xf32>
    %cst_98 = arith.constant dense<0xFF800000> : vector<8xf32>
    %177 = vector.multi_reduction <maximumf>, %176, %cst_98 [1] : vector<8x128xf32> to vector<8xf32>
    %178 = vector.shape_cast %177 : vector<8xf32> to vector<8x1xf32>
    %179 = vector.broadcast %178 : vector<8x1xf32> to vector<8x128xf32>
    %180 = arith.subf %176, %179 : vector<8x128xf32>
    %181 = math.exp %180 : vector<8x128xf32>
    %cst_99 = arith.constant dense<0.000000e+00> : vector<8xf32>
    %182 = vector.multi_reduction <add>, %181, %cst_99 [1] : vector<8x128xf32> to vector<8xf32>
    %183 = vector.shape_cast %182 : vector<8xf32> to vector<8x1xf32>
    %184 = math.log %183 : vector<8x1xf32>
    %185 = vector.broadcast %184 : vector<8x1xf32> to vector<8x128xf32>
    %186 = arith.subf %180, %185 : vector<8x128xf32>
    %c0_100 = arith.constant 0 : index
    %c0_101 = arith.constant 0 : index
    %187 = vector.load %arg10[%c0_100, %c0_101] : memref<8x128xf32, #tpu.memory_space<vmem>>, vector<8x128xf32>
    tpu.vector_store %arg10[%c0_100, %c0_101], %186 {strides = array<i32>} : memref<8x128xf32, #tpu.memory_space<vmem>>, vector<8x128xf32>,
    %c0_102 = arith.constant 0 : index
    %c0_103 = arith.constant 0 : index
    %188 = vector.load %arg11[%c0_102, %c0_103] : memref<8x128xf32, #tpu.memory_space<vmem>>, vector<8x128xf32>
    tpu.vector_store %arg11[%c0_102, %c0_103], %171 {strides = array<i32>} : memref<8x128xf32, #tpu.memory_space<vmem>>, vector<8x128xf32>,
    %c0_104 = arith.constant 0 : index
    %c0_105 = arith.constant 0 : index
    %189 = vector.load %arg12[%c0_104, %c0_105] : memref<8x128xf32, #tpu.memory_space<vmem>>, vector<8x128xf32>
    tpu.vector_store %arg12[%c0_104, %c0_105], %169 {strides = array<i32>} : memref<8x128xf32, #tpu.memory_space<vmem>>, vector<8x128xf32>,
    return
  }
  func.func @transform_1(%arg0: i32, %arg1: memref<8xi32, #tpu.memory_space<smem>>) -> (i32, i32) {
    %c0_i32 = arith.constant 0 : i32
    %c0_i32_0 = arith.constant 0 : i32
    return %arg0, %c0_i32 : i32, i32
  }
  func.func @transform_2(%arg0: i32, %arg1: memref<8xi32, #tpu.memory_space<smem>>) -> (i32, i32) {
    %c0_i32 = arith.constant 0 : i32
    %c0_i32_0 = arith.constant 0 : i32
    return %arg0, %c0_i32 : i32, i32
  }
  func.func @transform_3(%arg0: i32, %arg1: memref<8xi32, #tpu.memory_space<smem>>) -> (i32, i32) {
    %c0_i32 = arith.constant 0 : i32
    %c0_i32_0 = arith.constant 0 : i32
    %c0_i32_1 = arith.constant 0 : i32
    return %c0_i32, %c0_i32_0 : i32, i32
  }
  func.func @transform_4(%arg0: i32, %arg1: memref<8xi32, #tpu.memory_space<smem>>) -> (i32, i32) {
    %c0_i32 = arith.constant 0 : i32
    %c0_i32_0 = arith.constant 0 : i32
    %c0_i32_1 = arith.constant 0 : i32
    return %c0_i32, %c0_i32_0 : i32, i32
  }
  func.func @transform_5(%arg0: i32, %arg1: memref<8xi32, #tpu.memory_space<smem>>) -> (i32, i32) {
    %c0_i32 = arith.constant 0 : i32
    %c0_i32_0 = arith.constant 0 : i32
    %c0_i32_1 = arith.constant 0 : i32
    return %c0_i32, %c0_i32_0 : i32, i32
  }
  func.func @transform_6(%arg0: i32, %arg1: memref<8xi32, #tpu.memory_space<smem>>) -> (i32, i32) {
    %c0_i32 = arith.constant 0 : i32
    %c0_i32_0 = arith.constant 0 : i32
    %c0_i32_1 = arith.constant 0 : i32
    return %c0_i32, %c0_i32_0 : i32, i32
  }
  func.func @transform_7(%arg0: i32, %arg1: memref<8xi32, #tpu.memory_space<smem>>) -> (i32, i32) {
    %c0_i32 = arith.constant 0 : i32
    %c0_i32_0 = arith.constant 0 : i32
    %c0_i32_1 = arith.constant 0 : i32
    return %c0_i32, %c0_i32_0 : i32, i32
  }
  func.func @transform_8(%arg0: i32, %arg1: memref<8xi32, #tpu.memory_space<smem>>) -> (i32, i32) {
    %c0_i32 = arith.constant 0 : i32
    %c0_i32_0 = arith.constant 0 : i32
    return %arg0, %c0_i32 : i32, i32
  }
  func.func @transform_9(%arg0: i32, %arg1: memref<8xi32, #tpu.memory_space<smem>>) -> (i32, i32) {
    %c0_i32 = arith.constant 0 : i32
    %c0_i32_0 = arith.constant 0 : i32
    return %arg0, %c0_i32 : i32, i32
  }
  func.func @transform_10(%arg0: i32, %arg1: memref<8xi32, #tpu.memory_space<smem>>) -> (i32, i32) {
    %c0_i32 = arith.constant 0 : i32
    %c0_i32_0 = arith.constant 0 : i32
    return %arg0, %c0_i32 : i32, i32
  }
}

</mosaic_0001>

<bundles_post_ra>
// kernel: tpu_custom_call.1
= control target key start
LH: loop header
LB: loop body
LE: loop exit
PB: predicated region body
PF: predicated region fallthrough
CT: control target
= control target key end

     0   :  { %s1238_s20 = smov [#allocation5]   ;;  %s1668_s0 = inlined_call_operand.hbm [shape: s32[8], index: 0, kind: input, shape index: {}]   ;;  %s1669_s1 = inlined_call_operand.hbm [shape: f32[16,128], index: 1, kind: input, shape index: {}]   ;;  %s1670_s2 = inlined_call_operand.hbm [shape: f32[8,128], index: 2, kind: input, shape index: {}]   ;;  %s1671_s3 = inlined_call_operand.hbm [shape: f32[8,128], index: 3, kind: input, shape index: {}]   ;;  %s1672_s4 = inlined_call_operand.hbm [shape: f32[128,512], index: 4, kind: input, shape index: {}]   ;;  %s1673_s5 = inlined_call_operand.hbm [shape: f32[128,512], index: 5, kind: input, shape index: {}]   ;;  %s1674_s6 = inlined_call_operand.vmem [shape: f32[1,512], index: 6, kind: input, shape index: {}]   ;;  %s1675_s7 = inlined_call_operand.hbm [shape: f32[128,128], index: 7, kind: input, shape index: {}]   ;;  %s1676_s8 = inlined_call_operand.vmem [shape: f32[1,128], index: 8, kind: input, shape index: {}]   ;;  %s1677_s9 = inlined_call_operand.hbm [shape: f32[8,128], index: 9, kind: output, shape index: {0}]   ;;  %s1678_s10 = inlined_call_operand.hbm [shape: f32[8,128], index: 10, kind: output, shape index: {1}]   ;;  %s1679_s11 = inlined_call_operand.hbm [shape: f32[8,128], index: 11, kind: output, shape index: {2}]  }
   0x1   :  { %s18_s19 = sshll.u32 %s1668_s0, 4  ;;  %s19_s19 = int_to_ptr.hbm [resolvable:$true] %s18_s19 }
   0x2   :  { %21 = dma.hbm_to_smem %s19_s19, 16, %s1238_s20, [#allocation4] }
   0x3   :  { %1210 = dma.done.wait [#allocation4], 16 }
   0x4   :  { %1211 = vsyncadd [#allocation4], 4294967280 }
   0x5   :  { %24 = sfence }
   0x6   :  { %25 = vsyncpa [#allocation7], 0 }
   0x7   :  { %26 = vsyncpa [#allocation10], 0 }
   0x8   :  { %27 = vsyncpa [#allocation13], 0 }
   0x9   :  { %28 = vsyncpa [#allocation8], 0  ;;  %s46_s23 = sshll.u32 %s1671_s3, 4  ;;  %s47_s23 = int_to_ptr.hbm [resolvable:$true] %s46_s23 }
   0xa   :  { %29 = vsyncpa [#allocation17], 0  ;;  %s1239_s24 = smov [#allocation9]   ;;  %s69_s27 = sshll.u32 %s1673_s5, 4  ;;  %s70_s27 = int_to_ptr.hbm [resolvable:$true] %s69_s27 }
   0xb   :  { %s48_s25 = sshll.u32 %s1239_s24, 4  ;;  %s1240_s28 = smov [#allocation12]   ;;  %s49_s25 = int_to_ptr.vmem [resolvable:$true] %s48_s25 }
   0xc   :  { %51 = dma.hbm_to_vmem [thread:$0]  %s47_s23, 128, %s49_s25, [#allocation10]  }
   0xd   :  { %s71_s29 = sshll.u32 %s1240_s28, 4  ;;  %s35_s13 = sshll.u32 %s1670_s2, 4  ;;  %s72_s29 = int_to_ptr.vmem [resolvable:$true] %s71_s29  ;;  %s36_s13 = int_to_ptr.hbm [resolvable:$true] %s35_s13 }
   0xe   :  { %s1241_s3 = smov 512   ;;  %s1242_s14 = smov 32  }
   0xf   :  { %77 = dma.hbm_to_vmem [thread:$0]  %s70_s27, 8192, %s72_s29, [#allocation13], %s1241_s3, %s1241_s3, %s1242_s14  }
  0x10   :  { %s56_s17 = sshll.u32 %s1672_s4, 4  ;;  %s1243_s18 = smov [#allocation6]   ;;  %s57_s17 = int_to_ptr.hbm [resolvable:$true] %s56_s17 }
  0x11   :  { %s37_s19 = sshll.u32 %s1243_s18, 4  ;;  %s1244_s5 = smov [#allocation11]   ;;  %s38_s19 = int_to_ptr.vmem [resolvable:$true] %s37_s19 }
  0x12   :  { %40 = dma.hbm_to_vmem [thread:$0]  %s36_s13, 128, %s38_s19, [#allocation7]  }
  0x13   :  { %s58_s20 = sshll.u32 %s1244_s5, 4  ;;  %s84_s2 = sshll.u32 %s1675_s7, 4  ;;  %s59_s20 = int_to_ptr.vmem [resolvable:$true] %s58_s20  ;;  %s85_s2 = int_to_ptr.hbm [resolvable:$true] %s84_s2 }
  0x14   :  { %64 = dma.hbm_to_vmem [thread:$0]  %s57_s17, 8192, %s59_s20, [#allocation10], %s1241_s3, %s1241_s3, %s1242_s14  }
  0x15   :  { %s1245_s23 = smov [#allocation14]   ;;  %s1246_s25 = smov 128  }
  0x16   :  { %s86_s24 = sshll.u32 %s1245_s23, 4  ;;  %s1247_s0 = smov 8   ;;  %s87_s24 = int_to_ptr.vmem [resolvable:$true] %s86_s24 }
  0x17   :  { %92 = dma.hbm_to_vmem [thread:$0]  %s85_s2, 2048, %s87_s24, [#allocation13], %s1246_s25, %s1246_s25, %s1247_s0  }
  0x18   :  { %1212 = dma.done.wait [#allocation7], 128  }
  0x19   :  { %1213 = vsyncadd [#allocation7], 4294967168 }
  0x1a   :  { %1214 = dma.done.wait [#allocation10], 8320  }
  0x1b   :  { %1215 = vsyncadd [#allocation10], 4294958976 }
  0x1c   :  { %1216 = dma.done.wait [#allocation13], 10240  }
  0x1d   :  { %1217 = vsyncadd [#allocation13], 4294957056  ;;  %s116_s4 = sld [smem:[#allocation5]]  ;;  %s1248_s26 = smov [#allocation2]   ;;  %v1350_v0 = vld [vmem:[#allocation6] sm:$0xff]  ;;  %v1352_v1 = vld [vmem:[#allocation12] sm:$0xff] }
  0x1e   :  { %s1337_s27 = sshll.u32 %s1248_s26, 4  ;;  %s763_s7 = sld [smem:[#allocation5 + $0x1]]  ;;  %1681 = vst [vmem:[#allocation51_spill] sm:$0xff] %v1350_v0  ;;  %v1354_v2 = vld [vmem:[#allocation12 + $0x8] sm:$0xff]  ;;  %v1361_v3 = vld [vmem:[#allocation12 + $0x10] sm:$0xff]  ;;  %v1363_v4 = vld [vmem:[#allocation12 + $0x18] sm:$0xff]  ;;  %s128_s27 = int_to_ptr.vmem [resolvable:$true] %s1337_s27 }
  0x1f   :  { %s1249_s28 = smov [#allocation2 + $0x1]   ;;  %s1342_s30 = sld [smem:[#allocation5 + $0x2]]  ;;  %1682 = vst [vmem:[#allocation52_spill] sm:$0xff] %v1352_v1  ;;  %v1365_v5 = vld [vmem:[#allocation12 + $0x20] sm:$0xff]  ;;  %v1370_v6 = vld [vmem:[#allocation12 + $0x28] sm:$0xff]  ;;  %v1372_v7 = vld [vmem:[#allocation12 + $0x30] sm:$0xff] }
  0x20   :  { %s1340_s29 = sshll.u32 %s1249_s28, 4  ;;  %s1250_s12 = smov [#allocation2 + $0x2]   ;;  %1683 = vst [vmem:[#allocation53_spill] sm:$0xff] %v1354_v2  ;;  %v1374_v8 = vld [vmem:[#allocation12 + $0x38] sm:$0xff]  ;;  %v1378_v9 = vld [vmem:[#allocation12 + $0x40] sm:$0xff]  ;;  %v1380_v10 = vld [vmem:[#allocation12 + $0x48] sm:$0xff]  ;;  %s146_s29 = int_to_ptr.vmem [resolvable:$true] %s1340_s29 }
  0x21   :  { %s1345_s13 = sshll.u32 %s1250_s12, 4  ;;  %s1347_s3 = sld [smem:[#allocation5 + $0x3]]  ;;  %1684 = vst [vmem:[#allocation54_spill] sm:$0xff] %v1361_v3  ;;  %v1382_v11 = vld [vmem:[#allocation12 + $0x50] sm:$0xff]  ;;  %s164_s13 = int_to_ptr.vmem [resolvable:$true] %s1345_s13 }
  0x22   :  { %s1251_s17 = smov [#allocation2 + $0x3]   ;;  %1685 = vst [vmem:[#allocation55_spill] sm:$0xff] %v1363_v4  ;;  %s1387_s0 = scalar_lea.hbm %s1669_s1, 16 }
  0x23   :  { %s117_s16 = scalar_lea.hbm %s1669_s1, %s116_s4  ;;  %s1359_s18 = sshll.u32 %s1251_s17, 4  ;;  %1686 = vst [vmem:[#allocation56_spill] sm:$0xff] %v1365_v5  ;;  %s182_s18 = int_to_ptr.vmem [resolvable:$true] %s1359_s18 }
  0x24   :  { %s125_s19 = sshll.u32 %s117_s16, 4  ;;  %s133_s21 = scalar_lea.hbm %s1669_s1, %s763_s7  ;;  %1687 = vst [vmem:[#allocation57_spill] sm:$0xff] %v1370_v6  ;;  %s126_s19 = int_to_ptr.hbm [resolvable:$true] %s125_s19 }
  0x25   :  { %1688 = vst [vmem:[#allocation58_spill] sm:$0xff] %v1372_v7  ;;  %s1376_s22 = sshll.u32 %s133_s21, 4  ;;  %s946_s2 = sshra.s32 %s126_s19, 4  ;;  %s947_s2 = int_to_ptr.hbm [resolvable:$true] %s946_s2  ;;  %s144_s22 = int_to_ptr.hbm [resolvable:$true] %s1376_s22 }
  0x26   :  { %1689 = vst [vmem:[#allocation59_spill] sm:$0xff] %v1374_v8  ;;  %s948_s23 = scalar_lea.hbm %s947_s2, 1  ;;  %p951_p1 = scmp.lt.s32.totalorder %s947_s2, %s1669_s1 }
  0x27   :  { %1690 = vst [vmem:[#allocation60_spill] sm:$0xff] %v1378_v9  ;;  %p949_p0 = scmp.ne.s32.totalorder %s947_s2, %s948_s23  ;;  %p952_p2 = scmp.lt.s32.totalorder %s1387_s0, %s948_s23 }
  0x28   :  { %1691 = vst [vmem:[#allocation61_spill] sm:$0xff] %v1380_v10 }
  0x29   :  { %1692 = vst [vmem:[#allocation62_spill] sm:$0xff] %v1382_v11  ;;  %p953_p3 = por %p952_p2, %p951_p1 }
  0x2b   :  { %p954_p4 = pnand %p953_p3, %p949_p0 }
  0x2d   :  { %957 = shalt.err (!%p954_p4)  }
  0x2e   :  { %130 = dma.hbm_to_vmem [thread:$0]  %s126_s19, 16, %s128_s27, [#allocation3]  ;;  %v1395_v12 = vld [vmem:[#allocation12 + $0x58] sm:$0xff]  ;;  %v1397_v13 = vld [vmem:[#allocation12 + $0x60] sm:$0xff]  ;;  %v1399_v14 = vld [vmem:[#allocation12 + $0x68] sm:$0xff] }
  0x2f   :  { %1693 = vst [vmem:[#allocation63_spill] sm:$0xff] %v1395_v12  ;;  %s151_s12 = scalar_lea.hbm %s1669_s1, %s1342_s30  ;;  %v1406_v15 = vld [vmem:[#allocation12 + $0x70] sm:$0xff]  ;;  %v1408_v16 = vld [vmem:[#allocation12 + $0x78] sm:$0xff]  ;;  %v1410_v17 = vld [vmem:[#allocation12 + $0x80] sm:$0xff]  ;;  %s970_s14 = sshra.s32 %s144_s22, 4  ;;  %s971_s14 = int_to_ptr.hbm [resolvable:$true] %s970_s14 }
  0x30   :  { %1694 = vst [vmem:[#allocation64_spill] sm:$0xff] %v1397_v13  ;;  %s972_s27 = scalar_lea.hbm %s971_s14, 1  ;;  %p975_p6 = scmp.lt.s32.totalorder %s971_s14, %s1669_s1 }
  0x31   :  { %1695 = vst [vmem:[#allocation65_spill] sm:$0xff] %v1399_v14  ;;  %p973_p5 = scmp.ne.s32.totalorder %s971_s14, %s972_s27  ;;  %p976_p7 = scmp.lt.s32.totalorder %s1387_s0, %s972_s27 }
  0x32   :  { %1696 = vst [vmem:[#allocation66_spill] sm:$0xff] %v1406_v15 }
  0x33   :  { %1697 = vst [vmem:[#allocation67_spill] sm:$0xff] %v1408_v16  ;;  %p977_p8 = por %p976_p7, %p975_p6 }
  0x35   :  { %p978_p9 = pnand %p977_p8, %p973_p5 }
  0x37   :  { %981 = shalt.err (!%p978_p9)  }
  0x38   :  { %148 = dma.hbm_to_vmem [thread:$0]  %s144_s22, 16, %s146_s29, [#allocation3 + $0x1]  ;;  %v1418_v18 = vld [vmem:[#allocation12 + $0x88] sm:$0xff]  ;;  %v1420_v19 = vld [vmem:[#allocation12 + $0x90] sm:$0xff]  ;;  %v1422_v20 = vld [vmem:[#allocation12 + $0x98] sm:$0xff] }
  0x39   :  { %s161_s30 = sshll.u32 %s151_s12, 4  ;;  %s169_s5 = scalar_lea.hbm %s1669_s1, %s1347_s3  ;;  %v1428_v21 = vld [vmem:[#allocation12 + $0xa0] sm:$0xff]  ;;  %v1430_v22 = vld [vmem:[#allocation12 + $0xa8] sm:$0xff]  ;;  %v1432_v23 = vld [vmem:[#allocation12 + $0xb0] sm:$0xff]  ;;  %s162_s30 = int_to_ptr.hbm [resolvable:$true] %s161_s30 }
  0x3a   :  { %s1434_s29 = sshll.u32 %s169_s5, 4  ;;  %v1436_v24 = vld [vmem:[#allocation12 + $0xb8] sm:$0xff]  ;;  %v1438_v25 = vld [vmem:[#allocation12 + $0xc0] sm:$0xff]  ;;  %v1440_v26 = vld [vmem:[#allocation12 + $0xc8] sm:$0xff]  ;;  %s994_s20 = sshra.s32 %s162_s30, 4  ;;  %s995_s20 = int_to_ptr.hbm [resolvable:$true] %s994_s20  ;;  %s180_s29 = int_to_ptr.hbm [resolvable:$true] %s1434_s29 }
  0x3b   :  { %s996_s21 = scalar_lea.hbm %s995_s20, 1  ;;  %p999_p11 = scmp.lt.s32.totalorder %s995_s20, %s1669_s1 }
  0x3c   :  { %p997_p10 = scmp.ne.s32.totalorder %s995_s20, %s996_s21  ;;  %p1000_p12 = scmp.lt.s32.totalorder %s1387_s0, %s996_s21 }
  0x3e   :  { %p1001_p13 = por %p1000_p12, %p999_p11 }
  0x40   :  { %p1002_p0 = pnand %p1001_p13, %p997_p10 }
  0x42   :  { %1005 = shalt.err (!%p1002_p0)  }
  0x43   :  { %166 = dma.hbm_to_vmem [thread:$0]  %s162_s30, 16, %s164_s13, [#allocation3 + $0x2]  ;;  %v1448_v27 = vld [vmem:[#allocation12 + $0xd0] sm:$0xff]  ;;  %v1450_v28 = vld [vmem:[#allocation12 + $0xd8] sm:$0xff]  ;;  %v1452_v29 = vld [vmem:[#allocation12 + $0xe0] sm:$0xff] }
  0x44   :  { %v1456_v30 = vld [vmem:[#allocation12 + $0xe8] sm:$0xff]  ;;  %v1458_v31 = vld [vmem:[#allocation12 + $0xf0] sm:$0xff]  ;;  %v1460_v32 = vld [vmem:[#allocation12 + $0xf8] sm:$0xff]  ;;  %s1018_s2 = sshra.s32 %s180_s29, 4  ;;  %s1019_s2 = int_to_ptr.hbm [resolvable:$true] %s1018_s2 }
  0x45   :  { %s1020_s23 = scalar_lea.hbm %s1019_s2, 1  ;;  %p1023_p2 = scmp.lt.s32.totalorder %s1019_s2, %s1669_s1 }
  0x46   :  { %p1021_p1 = scmp.ne.s32.totalorder %s1019_s2, %s1020_s23  ;;  %p1024_p3 = scmp.lt.s32.totalorder %s1387_s0, %s1020_s23 }
  0x48   :  { %p1025_p4 = por %p1024_p3, %p1023_p2 }
  0x4a   :  { %p1026_p5 = pnand %p1025_p4, %p1021_p1 }
  0x4c   :  { %1029 = shalt.err (!%p1026_p5)  }
  0x4d   :  { %184 = dma.hbm_to_vmem [thread:$0]  %s180_s29, 16, %s182_s18, [#allocation3 + $0x3]  ;;  %v1466_v33 = vld [vmem:[#allocation12 + $0x100] sm:$0xff]  ;;  %v1468_v34 = vld [vmem:[#allocation12 + $0x108] sm:$0xff]  ;;  %v1470_v35 = vld [vmem:[#allocation12 + $0x110] sm:$0xff] }
  0x4e   :  { %s1472_s25 = sld [smem:[#allocation5 + $0x4]]  ;;  %v1474_v36 = vld [vmem:[#allocation12 + $0x118] sm:$0xff]  ;;  %v1476_v37 = vld [vmem:[#allocation12 + $0x120] sm:$0xff]  ;;  %v1478_v38 = vld [vmem:[#allocation12 + $0x128] sm:$0xff]  ;;  %s1252_s4 = smov [#allocation2 + $0x4]  }
  0x4f   :  { %s1480_s26 = sshll.u32 %s1252_s4, 4  ;;  %s1482_s7 = sld [smem:[#allocation5 + $0x5]]  ;;  %v1484_v39 = vld [vmem:[#allocation12 + $0x130] sm:$0xff]  ;;  %v1486_v40 = vld [vmem:[#allocation12 + $0x138] sm:$0xff]  ;;  %v1488_v41 = vld [vmem:[#allocation12 + $0x140] sm:$0xff]  ;;  %s200_s26 = int_to_ptr.vmem [resolvable:$true] %s1480_s26 }
  0x50   :  { %v1491_v42 = vld [vmem:[#allocation12 + $0x148] sm:$0xff]  ;;  %v1493_v43 = vld [vmem:[#allocation12 + $0x150] sm:$0xff]  ;;  %v1495_v44 = vld [vmem:[#allocation12 + $0x158] sm:$0xff]  ;;  %s1253_s18 = smov [#allocation2 + $0x5]   ;;  %s1499_s12 = sld [smem:[#allocation5 + $0x6]] }
  0x51   :  { %s1497_s28 = sshll.u32 %s1253_s18, 4  ;;  %v1501_v45 = vld [vmem:[#allocation12 + $0x160] sm:$0xff]  ;;  %v1503_v46 = vld [vmem:[#allocation12 + $0x168] sm:$0xff]  ;;  %v1505_v47 = vld [vmem:[#allocation12 + $0x170] sm:$0xff]  ;;  %s1254_s14 = smov [#allocation2 + $0x6]   ;;  %s218_s28 = int_to_ptr.vmem [resolvable:$true] %s1497_s28 }
  0x52   :  { %v1508_v48 = vld [vmem:[#allocation12 + $0x178] sm:$0xff]  ;;  %v1510_v49 = vld [vmem:[#allocation12 + $0x180] sm:$0xff]  ;;  %v1512_v50 = vld [vmem:[#allocation12 + $0x188] sm:$0xff]  ;;  %s1514_s27 = sshll.u32 %s1254_s14, 4  ;;  %s1516_s15 = sld [smem:[#allocation5 + $0x7]]  ;;  %s236_s27 = int_to_ptr.vmem [resolvable:$true] %s1514_s27 }
  0x53   :  { %v1518_v51 = vld [vmem:[#allocation12 + $0x190] sm:$0xff]  ;;  %v1520_v52 = vld [vmem:[#allocation12 + $0x198] sm:$0xff]  ;;  %v1522_v53 = vld [vmem:[#allocation12 + $0x1a0] sm:$0xff] }
  0x54   :  { %s187_s17 = scalar_lea.hbm %s1669_s1, %s1472_s25  ;;  %v1529_v54 = vld [vmem:[#allocation12 + $0x1a8] sm:$0xff]  ;;  %v1531_v55 = vld [vmem:[#allocation12 + $0x1b0] sm:$0xff]  ;;  %v1533_v56 = vld [vmem:[#allocation12 + $0x1b8] sm:$0xff] }
  0x55   :  { %s197_s19 = sshll.u32 %s187_s17, 4  ;;  %s205_s20 = scalar_lea.hbm %s1669_s1, %s1482_s7  ;;  %v1539_v57 = vld [vmem:[#allocation12 + $0x1c0] sm:$0xff]  ;;  %v1541_v58 = vld [vmem:[#allocation12 + $0x1c8] sm:$0xff]  ;;  %v1543_v59 = vld [vmem:[#allocation12 + $0x1d0] sm:$0xff]  ;;  %s198_s19 = int_to_ptr.hbm [resolvable:$true] %s197_s19 }
  0x56   :  { %s215_s21 = sshll.u32 %s205_s20, 4  ;;  %v1545_v60 = vld [vmem:[#allocation12 + $0x1d8] sm:$0xff]  ;;  %v1547_v61 = vld [vmem:[#allocation12 + $0x1e0] sm:$0xff]  ;;  %v1549_v62 = vld [vmem:[#allocation12 + $0x1e8] sm:$0xff]  ;;  %s1042_s3 = sshra.s32 %s198_s19, 4  ;;  %s1043_s3 = int_to_ptr.hbm [resolvable:$true] %s1042_s3  ;;  %s216_s21 = int_to_ptr.hbm [resolvable:$true] %s215_s21 }
  0x57   :  { %s1044_s22 = scalar_lea.hbm %s1043_s3, 1  ;;  %p1047_p7 = scmp.lt.s32.totalorder %s1043_s3, %s1669_s1 }
  0x58   :  { %p1045_p6 = scmp.ne.s32.totalorder %s1043_s3, %s1044_s22  ;;  %p1048_p8 = scmp.lt.s32.totalorder %s1387_s0, %s1044_s22 }
  0x5a   :  { %p1049_p9 = por %p1048_p8, %p1047_p7 }
  0x5c   :  { %p1050_p10 = pnand %p1049_p9, %p1045_p6 }
  0x5e   :  { %1053 = shalt.err (!%p1050_p10)  }
  0x5f   :  { %202 = dma.hbm_to_vmem [thread:$0]  %s198_s19, 16, %s200_s26, [#allocation3 + $0x4]  ;;  %v1557_v63 = vld [vmem:[#allocation12 + $0x1f0] sm:$0xff]  ;;  %v1559_v0 = vld [vmem:[#allocation12 + $0x1f8] sm:$0xff] }
  0x60   :  { %s223_s25 = scalar_lea.hbm %s1669_s1, %s1499_s12  ;;  %s1066_s4 = sshra.s32 %s216_s21, 4  ;;  %s1067_s4 = int_to_ptr.hbm [resolvable:$true] %s1066_s4 }
  0x61   :  { %s1068_s7 = scalar_lea.hbm %s1067_s4, 1  ;;  %p1071_p12 = scmp.lt.s32.totalorder %s1067_s4, %s1669_s1 }
  0x62   :  { %p1069_p11 = scmp.ne.s32.totalorder %s1067_s4, %s1068_s7  ;;  %p1072_p13 = scmp.lt.s32.totalorder %s1387_s0, %s1068_s7 }
  0x64   :  { %p1073_p0 = por %p1072_p13, %p1071_p12 }
  0x66   :  { %p1074_p1 = pnand %p1073_p0, %p1069_p11 }
  0x68   :  { %1077 = shalt.err (!%p1074_p1)  }
  0x69   :  { %220 = dma.hbm_to_vmem [thread:$0]  %s216_s21, 16, %s218_s28, [#allocation3 + $0x5] }
  0x6a   :  { %s233_s26 = sshll.u32 %s223_s25, 4  ;;  %s241_s30 = scalar_lea.hbm %s1669_s1, %s1516_s15  ;;  %s234_s26 = int_to_ptr.hbm [resolvable:$true] %s233_s26 }
  0x6b   :  { %s251_s17 = sshll.u32 %s241_s30, 4  ;;  %s1090_s19 = sshra.s32 %s234_s26, 4  ;;  %s1091_s19 = int_to_ptr.hbm [resolvable:$true] %s1090_s19  ;;  %s252_s17 = int_to_ptr.hbm [resolvable:$true] %s251_s17 }
  0x6c   :  { %s1092_s5 = scalar_lea.hbm %s1091_s19, 1  ;;  %p1095_p3 = scmp.lt.s32.totalorder %s1091_s19, %s1669_s1 }
  0x6d   :  { %p1093_p2 = scmp.ne.s32.totalorder %s1091_s19, %s1092_s5  ;;  %p1096_p4 = scmp.lt.s32.totalorder %s1387_s0, %s1092_s5 }
  0x6f   :  { %p1097_p5 = por %p1096_p4, %p1095_p3 }
  0x71   :  { %p1098_p6 = pnand %p1097_p5, %p1093_p2 }
  0x73   :  { %1101 = shalt.err (!%p1098_p6)  }
  0x74   :  { %238 = dma.hbm_to_vmem [thread:$0]  %s234_s26, 16, %s236_s27, [#allocation3 + $0x6] }
  0x75   :  { %s1255_s28 = smov [#allocation2 + $0x7]   ;;  %s1114_s21 = sshra.s32 %s252_s17, 4  ;;  %s1115_s21 = int_to_ptr.hbm [resolvable:$true] %s1114_s21 }
  0x76   :  { %s253_s15 = sshll.u32 %s1255_s28, 4  ;;  %s1116_s3 = scalar_lea.hbm %s1115_s21, 1  ;;  %s254_s15 = int_to_ptr.vmem [resolvable:$true] %s253_s15 }
  0x77   :  { %p1117_p7 = scmp.ne.s32.totalorder %s1115_s21, %s1116_s3  ;;  %p1119_p8 = scmp.lt.s32.totalorder %s1115_s21, %s1669_s1 }
  0x78   :  { %p1120_p9 = scmp.lt.s32.totalorder %s1387_s0, %s1116_s3 }
  0x7a   :  { %p1121_p10 = por %p1120_p9, %p1119_p8 }
  0x7c   :  { %p1122_p11 = pnand %p1121_p10, %p1117_p7 }
  0x7e   :  { %1125 = shalt.err (!%p1122_p11)  }
  0x7f   :  { %256 = dma.hbm_to_vmem [thread:$0]  %s252_s17, 16, %s254_s15, [#allocation3 + $0x7] }
  0x80   :  { %1218 = dma.done.wait [#allocation3], 16 }
  0x81   :  { %1219 = vsyncadd [#allocation3], 4294967280 }
  0x82   :  { %1220 = dma.done.wait [#allocation3 + $0x1], 16 }
  0x83   :  { %1221 = vsyncadd [#allocation3 + $0x1], 4294967280 }
  0x84   :  { %1222 = dma.done.wait [#allocation3 + $0x2], 16 }
  0x85   :  { %1223 = vsyncadd [#allocation3 + $0x2], 4294967280 }
  0x86   :  { %1224 = dma.done.wait [#allocation3 + $0x3], 16 }
  0x87   :  { %1225 = vsyncadd [#allocation3 + $0x3], 4294967280 }
  0x88   :  { %1226 = dma.done.wait [#allocation3 + $0x4], 16 }
  0x89   :  { %1227 = vsyncadd [#allocation3 + $0x4], 4294967280 }
  0x8a   :  { %1228 = dma.done.wait [#allocation3 + $0x5], 16 }
  0x8b   :  { %1229 = vsyncadd [#allocation3 + $0x5], 4294967280 }
  0x8c   :  { %1230 = dma.done.wait [#allocation3 + $0x6], 16 }
  0x8d   :  { %1231 = vsyncadd [#allocation3 + $0x6], 4294967280 }
  0x8e   :  { %1232 = dma.done.wait [#allocation3 + $0x7], 16 }
  0x8f   :  { %1233 = vsyncadd [#allocation3 + $0x7], 4294967280  ;;  %v400_v4 = vld [vmem:[#allocation11 + $0x1e0] sm:$0xff]  ;;  %v401_v3 = vld [vmem:[#allocation11 + $0x1e8] sm:$0xff]  ;;  %s1256_s23 = smov [#allocation16]   ;;  %s668_s4 = sshll.u32 %s1678_s10, 4  ;;  %s669_s4 = int_to_ptr.hbm [resolvable:$true] %s668_s4 }
  0x90   :  { %v402_v2 = vld [vmem:[#allocation11 + $0x1f0] sm:$0xff]  ;;  %404 = vmatpush.msra.mxu0 %v400_v4  ;;  %424 = vmatpush.msra.mxu1 %v401_v3  ;;  %v403_v1 = vld [vmem:[#allocation11 + $0x1f8] sm:$0xff]  ;;  %v396_v8 = vld [vmem:[#allocation11 + $0x1c0] sm:$0xff]  ;;  %s666_s24 = sshll.u32 %s1256_s23, 4  ;;  %s1257_s7 = smov [#allocation18]   ;;  %s667_s24 = int_to_ptr.vmem [resolvable:$true] %s666_s24 }
  0x91   :  { %v397_v7 = vld [vmem:[#allocation11 + $0x1c8] sm:$0xff]  ;;  %444 = vmatpush.msra.mxu2 %v402_v2  ;;  %464 = vmatpush.msra.mxu3 %v403_v1  ;;  %v398_v6 = vld [vmem:[#allocation11 + $0x1d0] sm:$0xff]  ;;  %v399_v5 = vld [vmem:[#allocation11 + $0x1d8] sm:$0xff]  ;;  %s679_s26 = sshll.u32 %s1679_s11, 4  ;;  %s1258_s16 = smov [#allocation15]   ;;  %s680_s26 = int_to_ptr.hbm [resolvable:$true] %s679_s26 }
  0x92   :  { %v392_v12 = vld [vmem:[#allocation11 + $0x1a0] sm:$0xff]  ;;  %405 = vmatpush.msra.mxu0 %v396_v8  ;;  %425 = vmatpush.msra.mxu1 %v397_v7  ;;  %v393_v11 = vld [vmem:[#allocation11 + $0x1a8] sm:$0xff]  ;;  %v394_v10 = vld [vmem:[#allocation11 + $0x1b0] sm:$0xff]  ;;  %s655_s12 = sshll.u32 %s1258_s16, 4  ;;  %s657_s17 = sshll.u32 %s1677_s9, 4  ;;  %s656_s12 = int_to_ptr.vmem [resolvable:$true] %s655_s12  ;;  %s658_s17 = int_to_ptr.hbm [resolvable:$true] %s657_s17 }
  0x93   :  { %v395_v9 = vld [vmem:[#allocation11 + $0x1b8] sm:$0xff]  ;;  %445 = vmatpush.msra.mxu2 %v398_v6  ;;  %465 = vmatpush.msra.mxu3 %v399_v5  ;;  %v388_v16 = vld [vmem:[#allocation11 + $0x180] sm:$0xff]  ;;  %v389_v15 = vld [vmem:[#allocation11 + $0x188] sm:$0xff] }
  0x94   :  { %406 = vmatpush.msra.mxu0 %v392_v12  ;;  %426 = vmatpush.msra.mxu1 %v393_v11  ;;  %v390_v3 = vld [vmem:[#allocation11 + $0x190] sm:$0xff]  ;;  %v391_v4 = vld [vmem:[#allocation11 + $0x198] sm:$0xff]  ;;  %v384_v2 = vld [vmem:[#allocation11 + $0x160] sm:$0xff] }
  0x95   :  { %446 = vmatpush.msra.mxu2 %v394_v10  ;;  %466 = vmatpush.msra.mxu3 %v395_v9  ;;  %v385_v1 = vld [vmem:[#allocation11 + $0x168] sm:$0xff]  ;;  %v386_v14 = vld [vmem:[#allocation11 + $0x170] sm:$0xff]  ;;  %v387_v8 = vld [vmem:[#allocation11 + $0x178] sm:$0xff] }
  0x96   :  { %407 = vmatpush.msra.mxu0 %v388_v16  ;;  %427 = vmatpush.msra.mxu1 %v389_v15  ;;  %v380_v7 = vld [vmem:[#allocation11 + $0x140] sm:$0xff]  ;;  %v381_v13 = vld [vmem:[#allocation11 + $0x148] sm:$0xff]  ;;  %v382_v5 = vld [vmem:[#allocation11 + $0x150] sm:$0xff] }
  0x97   :  { %447 = vmatpush.msra.mxu2 %v390_v3  ;;  %467 = vmatpush.msra.mxu3 %v391_v4  ;;  %v383_v6 = vld [vmem:[#allocation11 + $0x158] sm:$0xff]  ;;  %v376_v11 = vld [vmem:[#allocation11 + $0x120] sm:$0xff]  ;;  %v377_v12 = vld [vmem:[#allocation11 + $0x128] sm:$0xff] }
  0x98   :  { %408 = vmatpush.msra.mxu0 %v384_v2  ;;  %428 = vmatpush.msra.mxu1 %v385_v1  ;;  %v378_v9 = vld [vmem:[#allocation11 + $0x130] sm:$0xff]  ;;  %v379_v10 = vld [vmem:[#allocation11 + $0x138] sm:$0xff]  ;;  %v372_v15 = vld [vmem:[#allocation11 + $0x100] sm:$0xff] }
  0x99   :  { %448 = vmatpush.msra.mxu2 %v386_v14  ;;  %468 = vmatpush.msra.mxu3 %v387_v8  ;;  %v373_v16 = vld [vmem:[#allocation11 + $0x108] sm:$0xff]  ;;  %v374_v3 = vld [vmem:[#allocation11 + $0x110] sm:$0xff]  ;;  %v375_v4 = vld [vmem:[#allocation11 + $0x118] sm:$0xff] }
  0x9a   :  { %409 = vmatpush.msra.mxu0 %v380_v7  ;;  %429 = vmatpush.msra.mxu1 %v381_v13  ;;  %v368_v2 = vld [vmem:[#allocation11 + $0xe0] sm:$0xff]  ;;  %v369_v1 = vld [vmem:[#allocation11 + $0xe8] sm:$0xff]  ;;  %v370_v14 = vld [vmem:[#allocation11 + $0xf0] sm:$0xff] }
  0x9b   :  { %449 = vmatpush.msra.mxu2 %v382_v5  ;;  %469 = vmatpush.msra.mxu3 %v383_v6  ;;  %v371_v8 = vld [vmem:[#allocation11 + $0xf8] sm:$0xff]  ;;  %v364_v13 = vld [vmem:[#allocation11 + $0xc0] sm:$0xff]  ;;  %v365_v7 = vld [vmem:[#allocation11 + $0xc8] sm:$0xff] }
  0x9c   :  { %410 = vmatpush.msra.mxu0 %v376_v11  ;;  %430 = vmatpush.msra.mxu1 %v377_v12  ;;  %v366_v5 = vld [vmem:[#allocation11 + $0xd0] sm:$0xff]  ;;  %v367_v6 = vld [vmem:[#allocation11 + $0xd8] sm:$0xff]  ;;  %v360_v11 = vld [vmem:[#allocation11 + $0xa0] sm:$0xff] }
  0x9d   :  { %450 = vmatpush.msra.mxu2 %v378_v9  ;;  %470 = vmatpush.msra.mxu3 %v379_v10  ;;  %v361_v12 = vld [vmem:[#allocation11 + $0xa8] sm:$0xff]  ;;  %v362_v9 = vld [vmem:[#allocation11 + $0xb0] sm:$0xff]  ;;  %v363_v10 = vld [vmem:[#allocation11 + $0xb8] sm:$0xff] }
  0x9e   :  { %411 = vmatpush.msra.mxu0 %v372_v15  ;;  %431 = vmatpush.msra.mxu1 %v373_v16  ;;  %v356_v15 = vld [vmem:[#allocation11 + $0x80] sm:$0xff]  ;;  %v357_v16 = vld [vmem:[#allocation11 + $0x88] sm:$0xff] }
  0x9f   :  { %451 = vmatpush.msra.mxu2 %v374_v3  ;;  %471 = vmatpush.msra.mxu3 %v375_v4  ;;  %v358_v3 = vld [vmem:[#allocation11 + $0x90] sm:$0xff]  ;;  %v359_v4 = vld [vmem:[#allocation11 + $0x98] sm:$0xff] }
  0xa0   :  { %412 = vmatpush.msra.mxu0 %v368_v2  ;;  %432 = vmatpush.msra.mxu1 %v369_v1  ;;  %v352_v2 = vld [vmem:[#allocation11 + $0x60] sm:$0xff]  ;;  %v353_v1 = vld [vmem:[#allocation11 + $0x68] sm:$0xff] }
  0xa1   :  { %452 = vmatpush.msra.mxu2 %v370_v14  ;;  %472 = vmatpush.msra.mxu3 %v371_v8  ;;  %v354_v14 = vld [vmem:[#allocation11 + $0x70] sm:$0xff]  ;;  %v355_v8 = vld [vmem:[#allocation11 + $0x78] sm:$0xff] }
  0xa2   :  { %413 = vmatpush.msra.mxu0 %v364_v13  ;;  %433 = vmatpush.msra.mxu1 %v365_v7  ;;  %v348_v13 = vld [vmem:[#allocation11 + $0x40] sm:$0xff]  ;;  %v349_v7 = vld [vmem:[#allocation11 + $0x48] sm:$0xff] }
  0xa3   :  { %453 = vmatpush.msra.mxu2 %v366_v5  ;;  %473 = vmatpush.msra.mxu3 %v367_v6  ;;  %v350_v5 = vld [vmem:[#allocation11 + $0x50] sm:$0xff]  ;;  %v351_v6 = vld [vmem:[#allocation11 + $0x58] sm:$0xff] }
  0xa4   :  { %414 = vmatpush.msra.mxu0 %v360_v11  ;;  %434 = vmatpush.msra.mxu1 %v361_v12  ;;  %v344_v11 = vld [vmem:[#allocation11 + $0x20] sm:$0xff]  ;;  %v345_v12 = vld [vmem:[#allocation11 + $0x28] sm:$0xff] }
  0xa5   :  { %454 = vmatpush.msra.mxu2 %v362_v9  ;;  %474 = vmatpush.msra.mxu3 %v363_v10  ;;  %v346_v9 = vld [vmem:[#allocation11 + $0x30] sm:$0xff]  ;;  %v347_v10 = vld [vmem:[#allocation11 + $0x38] sm:$0xff] }
  0xa6   :  { %415 = vmatpush.msra.mxu0 %v356_v15  ;;  %435 = vmatpush.msra.mxu1 %v357_v16  ;;  %v340_v15 = vld [vmem:[#allocation11] sm:$0xff]  ;;  %v341_v16 = vld [vmem:[#allocation11 + $0x8] sm:$0xff] }
  0xa7   :  { %455 = vmatpush.msra.mxu2 %v358_v3  ;;  %475 = vmatpush.msra.mxu3 %v359_v4  ;;  %v342_v3 = vld [vmem:[#allocation11 + $0x10] sm:$0xff]  ;;  %v343_v4 = vld [vmem:[#allocation11 + $0x18] sm:$0xff] }
  0xa8   :  { %416 = vmatpush.msra.mxu0 %v352_v2  ;;  %436 = vmatpush.msra.mxu1 %v353_v1 }
  0xa9   :  { %456 = vmatpush.msra.mxu2 %v354_v14  ;;  %476 = vmatpush.msra.mxu3 %v355_v8 }
  0xaa   :  { %417 = vmatpush.msra.mxu0 %v348_v13  ;;  %437 = vmatpush.msra.mxu1 %v349_v7 }
  0xab   :  { %457 = vmatpush.msra.mxu2 %v350_v5  ;;  %477 = vmatpush.msra.mxu3 %v351_v6 }
  0xac   :  { %418 = vmatpush.msra.mxu0 %v344_v11  ;;  %438 = vmatpush.msra.mxu1 %v345_v12 }
  0xad   :  { %458 = vmatpush.msra.mxu2 %v346_v9  ;;  %478 = vmatpush.msra.mxu3 %v347_v10 }
  0xae   :  { %419 = vmatpush.msra.mxu0 %v340_v15  ;;  %439 = vmatpush.msra.mxu1 %v341_v16 }
  0xaf   :  { %459 = vmatpush.msra.mxu2 %v342_v3  ;;  %479 = vmatpush.msra.mxu3 %v343_v4  ;;  %v591_v3 = vld [vmem:[#allocation9] sm:$0xff] }
  0xb0   :  { %484 = vmatpush.msrb.mxu0 %v1547_v61  ;;  %504 = vmatpush.msrb.mxu1 %v1549_v62 }
  0xb1   :  { %524 = vmatpush.msrb.mxu2 %v1557_v63  ;;  %544 = vmatpush.msrb.mxu3 %v1559_v0  ;;  %v338_v0 = vld [vmem:[#allocation2] sm:$0xff] }
  0xb2   :  { %485 = vmatpush.msrb.mxu0 %v1539_v57  ;;  %505 = vmatpush.msrb.mxu1 %v1541_v58 }
  0xb3   :  { %525 = vmatpush.msrb.mxu2 %v1543_v59  ;;  %545 = vmatpush.msrb.mxu3 %v1545_v60 }
  0xb4   :  { %486 = vmatpush.msrb.mxu0 %v1522_v53  ;;  %506 = vmatpush.msrb.mxu1 %v1529_v54  ;;  %v597_v53 = vld [vmem:[#allocation14] sm:$0xff] }
  0xb5   :  { %526 = vmatpush.msrb.mxu2 %v1531_v55  ;;  %546 = vmatpush.msrb.mxu3 %v1533_v56 }
  0xb6   :  { %487 = vmatpush.msrb.mxu0 %v1510_v49  ;;  %507 = vmatpush.msrb.mxu1 %v1512_v50  ;;  %v600_v49 = vld [vmem:[#allocation14 + $0x18] sm:$0xff]  ;;  %v599_v50 = vld [vmem:[#allocation14 + $0x10] sm:$0xff] }
  0xb7   :  { %527 = vmatpush.msrb.mxu2 %v1518_v51  ;;  %547 = vmatpush.msrb.mxu3 %v1520_v52  ;;  %v598_v51 = vld [vmem:[#allocation14 + $0x8] sm:$0xff]  ;;  %v564_v52 = vld [vmem:[%s1674_s6] sm:$0xf] }
  0xb8   :  { %488 = vmatpush.msrb.mxu0 %v1501_v45  ;;  %508 = vmatpush.msrb.mxu1 %v1503_v46  ;;  %v602_v45 = vld [vmem:[#allocation14 + $0x28] sm:$0xff]  ;;  %v566_v56 = vperm.slane %v564_v52, 0  ;;  %v567_v57 = vperm.slane %v564_v52, 1  ;;  %v568_v14 = vperm.slane %v564_v52, 2  ;;  %v569_v8 = vperm.slane %v564_v52, 3 }
  0xb9   :  { %528 = vmatpush.msrb.mxu2 %v1505_v47  ;;  %548 = vmatpush.msrb.mxu3 %v1508_v48  ;;  %v601_v48 = vld [vmem:[#allocation14 + $0x20] sm:$0xff] }
  0xba   :  { %489 = vmatpush.msrb.mxu0 %v1488_v41  ;;  %509 = vmatpush.msrb.mxu1 %v1491_v42  ;;  %v606_v41 = vld [vmem:[#allocation14 + $0x48] sm:$0xff]  ;;  %v605_v42 = vld [vmem:[#allocation14 + $0x40] sm:$0xff] }
  0xbb   :  { %529 = vmatpush.msrb.mxu2 %v1493_v43  ;;  %549 = vmatpush.msrb.mxu3 %v1495_v44  ;;  %v604_v43 = vld [vmem:[#allocation14 + $0x38] sm:$0xff]  ;;  %v603_v44 = vld [vmem:[#allocation14 + $0x30] sm:$0xff] }
  0xbc   :  { %490 = vmatpush.msrb.mxu0 %v1476_v37  ;;  %510 = vmatpush.msrb.mxu1 %v1478_v38  ;;  %v610_v37 = vld [vmem:[#allocation14 + $0x68] sm:$0xff]  ;;  %v609_v38 = vld [vmem:[#allocation14 + $0x60] sm:$0xff] }
  0xbd   :  { %530 = vmatpush.msrb.mxu2 %v1484_v39  ;;  %550 = vmatpush.msrb.mxu3 %v1486_v40  ;;  %v608_v39 = vld [vmem:[#allocation14 + $0x58] sm:$0xff]  ;;  %v607_v40 = vld [vmem:[#allocation14 + $0x50] sm:$0xff] }
  0xbe   :  { %491 = vmatpush.msrb.mxu0 %v1466_v33  ;;  %511 = vmatpush.msrb.mxu1 %v1468_v34  ;;  %v1713_v33 = vld [vmem:[#allocation55_spill] sm:$0xff] }
  0xbf   :  { %531 = vmatpush.msrb.mxu2 %v1470_v35  ;;  %551 = vmatpush.msrb.mxu3 %v1474_v36  ;;  %v1714_v34 = vld [vmem:[#allocation51_spill] sm:$0xff]  ;;  %v611_v36 = vld [vmem:[#allocation14 + $0x70] sm:$0xff] }
  0xc0   :  { %492 = vmatpush.msrb.mxu0 %v1452_v29  ;;  %512 = vmatpush.msrb.mxu1 %v1456_v30  ;;  %v339_v29 = vmax.f32 %v338_v0, 0.0  ;;  %v1710_v30 = vld [vmem:[#allocation52_spill] sm:$0xff]  ;;  %v612_v35 = vld [vmem:[#allocation14 + $0x78] sm:$0xff] }
  0xc1   :  { %532 = vmatpush.msrb.mxu2 %v1458_v31  ;;  %552 = vmatpush.msrb.mxu3 %v1460_v32  ;;  %v1711_v31 = vld [vmem:[#allocation53_spill] sm:$0xff]  ;;  %v1712_v32 = vld [vmem:[#allocation54_spill] sm:$0xff] }
  0xc2   :  { %493 = vmatpush.msrb.mxu0 %v1438_v25  ;;  %513 = vmatpush.msrb.mxu1 %v1440_v26  ;;  %v1700_v25 = vld [vmem:[#allocation66_spill] sm:$0xff]  ;;  %v1707_v26 = vld [vmem:[#allocation57_spill] sm:$0xff] }
  0xc3   :  { %533 = vmatpush.msrb.mxu2 %v1448_v27  ;;  %553 = vmatpush.msrb.mxu3 %v1450_v28  ;;  %v1708_v27 = vld [vmem:[#allocation58_spill] sm:$0xff]  ;;  %v1709_v28 = vld [vmem:[#allocation59_spill] sm:$0xff] }
  0xc4   :  { %494 = vmatpush.msrb.mxu0 %v1428_v21  ;;  %514 = vmatpush.msrb.mxu1 %v1430_v22  ;;  %v1698_v21 = vld [vmem:[#allocation64_spill] sm:$0xff]  ;;  %v1699_v22 = vld [vmem:[#allocation65_spill] sm:$0xff] }
  0xc5   :  { %534 = vmatpush.msrb.mxu2 %v1432_v23  ;;  %554 = vmatpush.msrb.mxu3 %v1436_v24  ;;  %v1701_v23 = vld [vmem:[#allocation67_spill] sm:$0xff]  ;;  %v1702_v24 = vld [vmem:[#allocation60_spill] sm:$0xff] }
  0xc6   :  { %495 = vmatpush.msrb.mxu0 %v1410_v17  ;;  %515 = vmatpush.msrb.mxu1 %v1418_v18  ;;  %v1703_v17 = vld [vmem:[#allocation61_spill] sm:$0xff]  ;;  %v1704_v18 = vld [vmem:[#allocation62_spill] sm:$0xff] }
  0xc7   :  { %535 = vmatpush.msrb.mxu2 %v1420_v19  ;;  %555 = vmatpush.msrb.mxu3 %v1422_v20  ;;  %v1705_v19 = vld [vmem:[#allocation63_spill] sm:$0xff]  ;;  %v1706_v20 = vld [vmem:[#allocation56_spill] sm:$0xff] }
  0xc8   :  { %420 = vmatmul.f32.vlgmr.msra.gmra.mxu0 %v339_v29  ;;  %440 = vmatmul.f32.vlgmr.msra.gmra.mxu1 %v339_v29 }
  0xc9   :  { %460 = vmatmul.f32.vlgmr.msra.gmra.mxu2 %v339_v29  ;;  %480 = vmatmul.f32.vlgmr.msra.gmra.mxu3 %v339_v29 }
  0xca   :  { %496 = vmatpush.msrb.mxu0 %v1698_v21  ;;  %516 = vmatpush.msrb.mxu1 %v1699_v22 }
  0xcb   :  { %536 = vmatpush.msrb.mxu2 %v1700_v25  ;;  %556 = vmatpush.msrb.mxu3 %v1701_v23 }
  0xcc   :  { %497 = vmatpush.msrb.mxu0 %v1702_v24  ;;  %517 = vmatpush.msrb.mxu1 %v1703_v17 }
  0xcd   :  { %537 = vmatpush.msrb.mxu2 %v1704_v18  ;;  %557 = vmatpush.msrb.mxu3 %v1705_v19 }
  0xce   :  { %498 = vmatpush.msrb.mxu0 %v1706_v20  ;;  %518 = vmatpush.msrb.mxu1 %v1707_v26  ;;  %v799_v26 = vld [vmem:[%s1676_s8] ss:$0 sm:$0xff]  ;;  %s677_s8 = sshll.u32 %s1257_s7, 4  ;;  %s678_s8 = int_to_ptr.vmem [resolvable:$true] %s677_s8 }
  0xcf   :  { %538 = vmatpush.msrb.mxu2 %v1708_v27  ;;  %558 = vmatpush.msrb.mxu3 %v1709_v28 }
  0xd0   :  { %499 = vmatpush.msrb.mxu0 %v1710_v30  ;;  %519 = vmatpush.msrb.mxu1 %v1711_v31 }
  0xd1   :  { %539 = vmatpush.msrb.mxu2 %v1712_v32  ;;  %559 = vmatpush.msrb.mxu3 %v1713_v33 }
  0xd2   :  { %500 = vmatmul.f32.vlgmr.msrb.gmra.mxu0 %v1714_v34  ;;  %520 = vmatmul.f32.vlgmr.msrb.gmra.mxu1 %v1714_v34 }
  0xd3   :  { %540 = vmatmul.f32.vlgmr.msrb.gmra.mxu2 %v1714_v34  ;;  %560 = vmatmul.f32.vlgmr.msrb.gmra.mxu3 %v1714_v34 }
  0xd4   :  { %617 = vmatpush.msra.mxu0 %v612_v35 }
  0xd6   :  { %618 = vmatpush.msra.mxu0 %v611_v36 }
  0xd8   :  { %619 = vmatpush.msra.mxu0 %v610_v37 }
  0xda   :  { %620 = vmatpush.msra.mxu0 %v609_v38 }
  0xdc   :  { %621 = vmatpush.msra.mxu0 %v608_v39 }
  0xde   :  { %622 = vmatpush.msra.mxu0 %v607_v40 }
  0xe0   :  { %623 = vmatpush.msra.mxu0 %v606_v41 }
  0xe2   :  { %624 = vmatpush.msra.mxu0 %v605_v42 }
  0xe4   :  { %625 = vmatpush.msra.mxu0 %v604_v43 }
  0xe6   :  { %626 = vmatpush.msra.mxu0 %v603_v44 }
  0xe8   :  { %627 = vmatpush.msra.mxu0 %v602_v45 }
  0xea   :  { %628 = vmatpush.msra.mxu0 %v601_v48 }
  0xec   :  { %629 = vmatpush.msra.mxu0 %v600_v49 }
  0xee   :  { %630 = vmatpush.msra.mxu0 %v599_v50 }
  0xf0   :  { %631 = vmatpush.msra.mxu0 %v598_v51 }
  0xf2   :  { %632 = vmatpush.msra.mxu0 %v597_v53 }
 0x145   :  { %v421_v46 = vpop.f32.mrf.mxu0  ;;  %v441_v47 = vpop.f32.mrf.mxu1 }
 0x14c   :  { %v461_v54 = vpop.f32.mrf.mxu2  ;;  %v481_v55 = vpop.f32.mrf.mxu3 }
 0x14f   :  { %v501_v58 = vpop.f32.mrf.mxu0  ;;  %v521_v59 = vpop.f32.mrf.mxu1 }
 0x150   :  { %v502_v60 = vadd.f32 %v501_v58, %v421_v46  ;;  %v522_v61 = vadd.f32 %v521_v59, %v441_v47 }
 0x152   :  { %v574_v62 = vadd.f32 %v566_v56, %v502_v60  ;;  %v575_v63 = vadd.f32 %v567_v57, %v522_v61 }
 0x154   :  { %v578_v2 = vmul.f32 0.5, %v574_v62  ;;  %v582_v1 = vmul.f32 0.5, %v575_v63 }
 0x156   :  { %800 = vtanh.f32 %v578_v2  ;;  %v541_v13 = vpop.f32.mrf.mxu2  ;;  %v561_v7 = vpop.f32.mrf.mxu3 }
 0x157   :  { %802 = vtanh.f32 %v582_v1  ;;  %v542_v5 = vadd.f32 %v541_v13, %v461_v54  ;;  %v562_v6 = vadd.f32 %v561_v7, %v481_v55 }
 0x159   :  { %v576_v11 = vadd.f32 %v568_v14, %v542_v5  ;;  %v577_v12 = vadd.f32 %v569_v8, %v562_v6 }
 0x15b   :  { %804 = vtanh.f32 %v576_v11  ;;  %v587_v9 = vmul.f32 0.5, %v577_v12 }
 0x15c   :  { %v801_v10 = vpop.eup %800 }
 0x15d   :  { %v803_v15 = vpop.eup %802  ;;  %v580_v16 = vadd.f32 1.0, %v801_v10  ;;  %806 = vtanh.f32 %v587_v9 }
 0x15e   :  { %v584_v4 = vadd.f32 1.0, %v803_v15 }
 0x15f   :  { %v581_v0 = vmul.f32 0.5, %v580_v16 }
 0x160   :  { %v585_v29 = vmul.f32 0.5, %v584_v4 }
 0x161   :  { %v805_v21 = vpop.eup %804  ;;  %v592_v22 = vmul.f32 %v591_v3, %v581_v0 }
 0x162   :  { %v593_v25 = vmul.f32 %v805_v21, %v585_v29 }
 0x163   :  { %v807_v23 = vpop.eup %806 }
 0x164   :  { %v594_v24 = vadd.f32 %v593_v25, %v592_v22  ;;  %v589_v17 = vadd.f32 1.0, %v807_v23 }
 0x166   :  { %808 = vtanh.f32 %v594_v24  ;;  %649 = vst [vmem:[#allocation18] sm:$0xff] %v594_v24  ;;  %v590_v18 = vmul.f32 0.5, %v589_v17 }
 0x16c   :  { %v809_v19 = vpop.eup %808 }
 0x16d   :  { %v596_v20 = vmul.f32 %v809_v19, %v590_v18 }
 0x16f   :  { %633 = vmatmul.f32.vlgmr.msra.gmra.mxu0 %v596_v20  ;;  %648 = vst [vmem:[#allocation16] sm:$0xff] %v596_v20 }
 0x170   :  { %671 = dma.vmem_to_hbm [thread:$0]  %s667_s24, 128, %s669_s4, [#allocation17]  }
 0x171   :  { %682 = dma.vmem_to_hbm [thread:$0]  %s678_s8, 128, %s680_s26, [#allocation17]  }
 0x1ec   :  { %v634_v27 = vpop.f32.mrf.mxu0 }
 0x1ed   :  { %v635_v28 = vadd.f32 %v799_v26, %v634_v27 }
 0x1ef   :  { %637 = vmax.xlane.f32.xlu0 %v635_v28 }
 0x262   :  { %v638_v30 = vpop.xlane.xlu0 %637 }
 0x263   :  { %v639_v31 = vsub.f32 %v635_v28, %v638_v30 }
 0x265   :  { %v640_v32 = vmul.f32 1.442695, %v639_v31 }
 0x267   :  { %810 = vpow2.f32 %v640_v32 }
 0x26d   :  { %v811_v33 = vpop.eup %810 }
 0x26e   :  { %642 = vadd.xlane.f32.xlu0 %v811_v33 }
 0x2e1   :  { %v643_v34 = vpop.xlane.xlu0 %642 }
 0x2e2   :  { %812 = vlog2.f32 %v643_v34 }
 0x2e8   :  { %v813_v35 = vpop.eup %812 }
 0x2e9   :  { %v645_v36 = vmul.f32 0.6931472, %v813_v35 }
 0x2eb   :  { %v646_v37 = vsub.f32 %v639_v31, %v645_v36 }
 0x2ed   :  { %647 = vst [vmem:[#allocation15] sm:$0xff] %v646_v37 }
 0x2ee   :  { %660 = dma.vmem_to_hbm [thread:$0]  %s656_s12, 128, %s658_s17, [#allocation8]  }
 0x2ef   :  { %1234 = dma.done.wait [#allocation8], 128  }
 0x2f0   :  { %1235 = vsyncadd [#allocation8], 4294967168 }
 0x2f1   :  { %1236 = dma.done.wait [#allocation17], 256  }
 0x2f2   :  { %1237 = vsyncadd [#allocation17], 4294967040 }
 0x2f3   :  { %695 = vsyncpa [#allocation7], 1 }
 0x2f4   :  { %696 = vsyncpa [#allocation10], 1 }
 0x2f5   :  { %697 = vsyncpa [#allocation13], 1 }
 0x2f6   :  { %698 = vsyncpa [#allocation8], 1 }
 0x2f7   :  { %699 = vsyncpa [#allocation17], 1 }
 0x2f8   :  { %700 = vsyncmov [#allocation3] }
 0x2fb   :  { %s701_s11 = vpop.sfrf %700 }
 0x2fc   :  { %p770_p12 = scmp.ne.s32.totalorder %s701_s11, 0 }
 0x2fe   :  { %705 = shalt.err (%p770_p12)  }
 0x2ff   :  { %707 = vsyncmov [#allocation3 + $0x1] }
 0x302   :  { %s708_s9 = vpop.sfrf %707 }
 0x303   :  { %p771_p13 = scmp.ne.s32.totalorder %s708_s9, 0 }
 0x305   :  { %712 = shalt.err (%p771_p13)  }
 0x306   :  { %714 = vsyncmov [#allocation3 + $0x2] }
 0x309   :  { %s715_s19 = vpop.sfrf %714 }
 0x30a   :  { %p772_p0 = scmp.ne.s32.totalorder %s715_s19, 0 }
 0x30c   :  { %719 = shalt.err (%p772_p0)  }
 0x30d   :  { %721 = vsyncmov [#allocation3 + $0x3] }
 0x310   :  { %s722_s5 = vpop.sfrf %721 }
 0x311   :  { %p773_p1 = scmp.ne.s32.totalorder %s722_s5, 0 }
 0x313   :  { %726 = shalt.err (%p773_p1)  }
 0x314   :  { %728 = vsyncmov [#allocation3 + $0x4] }
 0x317   :  { %s729_s29 = vpop.sfrf %728 }
 0x318   :  { %p774_p2 = scmp.ne.s32.totalorder %s729_s29, 0 }
 0x31a   :  { %733 = shalt.err (%p774_p2)  }
 0x31b   :  { %735 = vsyncmov [#allocation3 + $0x5] }
 0x31e   :  { %s736_s20 = vpop.sfrf %735 }
 0x31f   :  { %p775_p3 = scmp.ne.s32.totalorder %s736_s20, 0 }
 0x321   :  { %740 = shalt.err (%p775_p3)  }
 0x322   :  { %742 = vsyncmov [#allocation3 + $0x6] }
 0x325   :  { %s743_s28 = vpop.sfrf %742 }
 0x326   :  { %p776_p4 = scmp.ne.s32.totalorder %s743_s28, 0 }
 0x328   :  { %747 = shalt.err (%p776_p4)  }
 0x329   :  { %749 = vsyncmov [#allocation3 + $0x7] }
 0x32c   :  { %s750_s15 = vpop.sfrf %749 }
 0x32d   :  { %p777_p5 = scmp.ne.s32.totalorder %s750_s15, 0 }
 0x32f   :  { %754 = shalt.err (%p777_p5)  }

</bundles_post_ra>
